<compile_context>
chip_gen: v6e
topology: v6e:2x2x1
jax: 0.10.0
libtpu: 0.0.40
codegen_flags: <defaults>
</compile_context>

<pallas_src>
import jax
import jax.numpy as jnp
from jax import lax
from jax.experimental import pallas as pl
from jax.experimental.pallas import tpu as pltpu

OP_NAMES = ("norm_ij", "norm_ij_sym", "norm_ik", "norm_ik_sym",
            "angle", "angle_sym", "area", "area_sym")
N_OPS = len(OP_NAMES)
N_IN_ROWS = 15      # 9 cell + 3 e_ij + 3 e_ik
N_OUT_ROWS = N_OPS * 9
LANES = 128
EPS = 1e-12


def _cdiv(a, b):
    return -(-a // b)


def _vfgrad_kernel(inp_ref, out_ref):
    # inp_ref : (15, S, 128)   row 3*a+b = cell[a,b]; rows 9..11 = e_ij; rows 12..14 = e_ik
    # out_ref : (72, S, 128)   row op*9 + a*3 + b = grad_field[op, a, b]
    # Every component is a dense (S,128) tile -> full-vreg VPU work, unmasked full-tile stores.
    c = [[inp_ref[3 * a + b] for b in range(3)] for a in range(3)]
    xij = [inp_ref[9 + a] for a in range(3)]
    xik = [inp_ref[12 + a] for a in range(3)]

    # Cartesian vectors u = e_ij @ cell, w = e_ik @ cell
    u = [xij[0] * c[0][b] + xij[1] * c[1][b] + xij[2] * c[2][b] for b in range(3)]
    w = [xik[0] * c[0][b] + xik[1] * c[1][b] + xik[2] * c[2][b] for b in range(3)]

    d_ij2 = u[0] * u[0] + u[1] * u[1] + u[2] * u[2]
    d_ik2 = w[0] * w[0] + w[1] * w[1] + w[2] * w[2]
    c_uw = u[0] * w[0] + u[1] * w[1] + u[2] * w[2]

    # rsqrt-based coefficients (EUP) instead of sqrt + divide chains (VALU)
    inv_dij = lax.rsqrt(d_ij2)
    inv_dik = lax.rsqrt(d_ik2)
    inv_dij2 = inv_dij * inv_dij
    inv_dik2 = inv_dik * inv_dik
    inv_prod = inv_dij * inv_dik
    cos = c_uw * inv_prod
    inv_sin = lax.rsqrt(jnp.maximum(1.0 - cos * cos, EPS))
    inv_area = lax.rsqrt(jnp.maximum(d_ij2 * d_ik2 - c_uw * c_uw, EPS))

    # Cartesian gradients, written as linear combinations of u and w with scalar coefficients.
    g_dij = [u[b] * inv_dij for b in range(3)]
    g_dik = [w[b] * inv_dik for b in range(3)]

    k_c = -inv_sin * inv_prod              # shared between g_ang_u and g_ang_w
    cs = cos * inv_sin
    k_u = cs * inv_dij2
    k_w = cs * inv_dik2
    g_ang_u = [k_c * w[b] + k_u * u[b] for b in range(3)]
    g_ang_w = [k_c * u[b] + k_w * w[b] for b in range(3)]

    a_u = inv_area * d_ik2
    a_w = inv_area * d_ij2
    a_c = -inv_area * c_uw                 # shared between g_area_u and g_area_w
    g_area_u = [a_u * u[b] + a_c * w[b] for b in range(3)]
    g_area_w = [a_c * u[b] + a_w * w[b] for b in range(3)]

    # Shared symmetric products: u(x)u, w(x)w, u(x)w + w(x)u (6 unique entries each, mirrored).
    uu = [[None] * 3 for _ in range(3)]
    ww = [[None] * 3 for _ in range(3)]
    uw_s = [[None] * 3 for _ in range(3)]
    for a in range(3):
        for b in range(a, 3):
            p = u[a] * u[b]
            uu[a][b] = p
            uu[b][a] = p
            q = w[a] * w[b]
            ww[a][b] = q
            ww[b][a] = q
            if a == b:
                s = 2.0 * (u[a] * w[a])
            else:
                s = u[a] * w[b] + u[b] * w[a]
            uw_s[a][b] = s
            uw_s[b][a] = s

    def store(op_idx, G):
        for a in range(3):
            for b in range(3):
                out_ref[op_idx * 9 + a * 3 + b] = G[a][b]

    # norm_ij : e_ij (x) g_dij            norm_ij_sym : sym(u (x) g_dij) = inv_dij * u (x) u
    store(0, [[xij[a] * g_dij[b] for b in range(3)] for a in range(3)])
    store(1, [[uu[a][b] * inv_dij for b in range(3)] for a in range(3)])
    # norm_ik / norm_ik_sym
    store(2, [[xik[a] * g_dik[b] for b in range(3)] for a in range(3)])
    store(3, [[ww[a][b] * inv_dik for b in range(3)] for a in range(3)])
    # angle : e_ij (x) g_ang_u + e_ik (x) g_ang_w
    store(4, [[xij[a] * g_ang_u[b] + xik[a] * g_ang_w[b] for b in range(3)] for a in range(3)])
    # angle_sym : k_c * sym(u(x)w) + k_u * u(x)u + k_w * w(x)w   (already symmetric)
    store(5, [[k_c * uw_s[a][b] + k_u * uu[a][b] + k_w * ww[a][b]
               for b in range(3)] for a in range(3)])
    # area : e_ij (x) g_area_u + e_ik (x) g_area_w
    store(6, [[xij[a] * g_area_u[b] + xik[a] * g_area_w[b] for b in range(3)] for a in range(3)])
    # area_sym : a_u * u(x)u + a_c * sym(u(x)w) + a_w * w(x)w   (already symmetric)
    store(7, [[a_u * uu[a][b] + a_c * uw_s[a][b] + a_w * ww[a][b]
               for b in range(3)] for a in range(3)])


def _vfgrad_impl(cell, batch_triplets, e_ij, e_ik, *, max_block_rows=64):
    T = e_ij.shape[0]
    rows = _cdiv(max(T, 1), LANES)
    block_rows = min(max_block_rows, _cdiv(rows, 8) * 8)      # multiple of 8, <= max_block_rows
    rows_pad = _cdiv(rows, block_rows) * block_rows
    t_pad = rows_pad * LANES
    grid = rows_pad // block_rows

    # --- preprocessing (gather + pack + pad), fused under the enclosing jit ---
    cell_g = cell[batch_triplets].astype(jnp.float32)          # (T, 3, 3) gather
    inp_t = jnp.concatenate(
        [cell_g.reshape(T, 9), e_ij.astype(jnp.float32), e_ik.astype(jnp.float32)],
        axis=1)                                                # (T, 15)
    # benign tail padding (identity cell, orthogonal unit e's) keeps padded lanes finite
    pad_row = jnp.array([1., 0., 0., 0., 1., 0., 0., 0., 1.,   # identity cell
                         1., 0., 0.,                           # e_ij
                         0., 1., 0.], jnp.float32)             # e_ik
    inp_t = jnp.concatenate(
        [inp_t, jnp.broadcast_to(pad_row, (t_pad - T, N_IN_ROWS))], axis=0)   # (T_pad, 15)
    inp = jnp.transpose(inp_t).reshape(N_IN_ROWS, rows_pad, LANES)            # (15, R, 128)

    out = pl.pallas_call(
        _vfgrad_kernel,
        out_shape=jax.ShapeDtypeStruct((N_OUT_ROWS, rows_pad, LANES), jnp.float32),
        grid=(grid,),
        in_specs=[pl.BlockSpec((N_IN_ROWS, block_rows, LANES), lambda i: (0, i, 0))],
        out_specs=pl.BlockSpec((N_OUT_ROWS, block_rows, LANES), lambda i: (0, i, 0)),
        compiler_params=pltpu.CompilerParams(dimension_semantics=("parallel",)),
    )(inp)

    out = out.reshape(N_OPS, 3, 3, t_pad)[..., :T]
    return jnp.transpose(out, (3, 0, 1, 2))                    # (T, N_OPS, 3, 3)


vfgrad_forward = jax.jit(_vfgrad_impl, static_argnames=("max_block_rows",))


def _reference(cell, batch_triplets, e_ij, e_ik):
    """Plain-JAX reference of the same math, for a correctness check."""
    cg = cell[batch_triplets].astype(jnp.float32)
    e_ij = e_ij.astype(jnp.float32)
    e_ik = e_ik.astype(jnp.float32)
    u = jnp.einsum("ta,tab->tb", e_ij, cg)
    w = jnp.einsum("ta,tab->tb", e_ik, cg)
    dij = jnp.linalg.norm(u, axis=-1, keepdims=True)
    dik = jnp.linalg.norm(w, axis=-1, keepdims=True)
    c_uw = jnp.sum(u * w, axis=-1, keepdims=True)
    cos = c_uw / (dij * dik)
    sin = jnp.sqrt(jnp.maximum(1.0 - cos * cos, EPS))
    g_dij = u / dij
    g_dik = w / dik
    g_ang_u = -(w / (dij * dik) - cos * u / dij**2) / sin
    g_ang_w = -(u / (dij * dik) - cos * w / dik**2) / sin
    area = jnp.sqrt(jnp.maximum(dij**2 * dik**2 - c_uw**2, EPS))
    g_area_u = (dik**2 * u - c_uw * w) / area
    g_area_w = (dij**2 * w - c_uw * u) / area

    def outer(x, g):
        return x[:, :, None] * g[:, None, :]

    def sym(A):
        return 0.5 * (A + jnp.swapaxes(A, -1, -2))

    fields = [
        outer(e_ij, g_dij),
        sym(outer(u, g_dij)),
        outer(e_ik, g_dik),
        sym(outer(w, g_dik)),
        outer(e_ij, g_ang_u) + outer(e_ik, g_ang_w),
        sym(outer(u, g_ang_u) + outer(w, g_ang_w)),
        outer(e_ij, g_area_u) + outer(e_ik, g_area_w),
        sym(outer(u, g_area_u) + outer(w, g_area_w)),
    ]
    return jnp.stack(fields, axis=1)


if __name__ == "__main__":
    key = jax.random.PRNGKey(0)
    k1, k2, k3, k4 = jax.random.split(key, 4)
    B, T = 2, 50
    cell = jnp.eye(3, dtype=jnp.float32)[None] + 0.1 * jax.random.normal(k1, (B, 3, 3), jnp.float32)
    batch_triplets = jax.random.randint(k2, (T,), 0, B)
    e_ij = jax.random.normal(k3, (T, 3), jnp.float32)
    e_ik = jax.random.normal(k4, (T, 3), jnp.float32)

    out = vfgrad_forward(cell, batch_triplets, e_ij, e_ik)
    out = jax.block_until_ready(out)

    ref = _reference(cell, batch_triplets, e_ij, e_ik)
    assert out.shape == (T, N_OPS, 3, 3), out.shape
    assert bool(jnp.all(jnp.isfinite(out)))
    assert bool(jnp.allclose(out, ref, atol=1e-4, rtol=1e-4)), float(jnp.max(jnp.abs(out - ref)))
    print("KERNEL_OK")
</pallas_src>

<mosaic_0001>
module attributes {stable_mosaic.version = 11 : i64} {
  func.func @_vfgrad_kernel(%arg0: i32, %arg1: memref<15x8x128xf32, #tpu.memory_space<vmem>>, %arg2: memref<72x8x128xf32, #tpu.memory_space<vmem>>) attributes {dimension_semantics = [#tpu.dimension_semantics<parallel>], iteration_bounds = array<i64: 1>, scalar_prefetch = 0 : i64, scratch_operands = 0 : i64, tpu.core_type = #tpu.core_type<tc>, window_params = [{transform_indices = @transform_0, window_bounds = array<i64: 15, 8, 128>}, {transform_indices = @transform_1, window_bounds = array<i64: 72, 8, 128>}]} {
    %c0 = arith.constant 0 : index
    %c0_0 = arith.constant 0 : index
    %c0_1 = arith.constant 0 : index
    %0 = vector.load %arg1[%c0, %c0_0, %c0_1] : memref<15x8x128xf32, #tpu.memory_space<vmem>>, vector<1x8x128xf32>
    %1 = vector.shape_cast %0 : vector<1x8x128xf32> to vector<8x128xf32>
    %c1 = arith.constant 1 : index
    %c0_2 = arith.constant 0 : index
    %c0_3 = arith.constant 0 : index
    %2 = vector.load %arg1[%c1, %c0_2, %c0_3] : memref<15x8x128xf32, #tpu.memory_space<vmem>>, vector<1x8x128xf32>
    %3 = vector.shape_cast %2 : vector<1x8x128xf32> to vector<8x128xf32>
    %c2 = arith.constant 2 : index
    %c0_4 = arith.constant 0 : index
    %c0_5 = arith.constant 0 : index
    %4 = vector.load %arg1[%c2, %c0_4, %c0_5] : memref<15x8x128xf32, #tpu.memory_space<vmem>>, vector<1x8x128xf32>
    %5 = vector.shape_cast %4 : vector<1x8x128xf32> to vector<8x128xf32>
    %c3 = arith.constant 3 : index
    %c0_6 = arith.constant 0 : index
    %c0_7 = arith.constant 0 : index
    %6 = vector.load %arg1[%c3, %c0_6, %c0_7] : memref<15x8x128xf32, #tpu.memory_space<vmem>>, vector<1x8x128xf32>
    %7 = vector.shape_cast %6 : vector<1x8x128xf32> to vector<8x128xf32>
    %c4 = arith.constant 4 : index
    %c0_8 = arith.constant 0 : index
    %c0_9 = arith.constant 0 : index
    %8 = vector.load %arg1[%c4, %c0_8, %c0_9] : memref<15x8x128xf32, #tpu.memory_space<vmem>>, vector<1x8x128xf32>
    %9 = vector.shape_cast %8 : vector<1x8x128xf32> to vector<8x128xf32>
    %c5 = arith.constant 5 : index
    %c0_10 = arith.constant 0 : index
    %c0_11 = arith.constant 0 : index
    %10 = vector.load %arg1[%c5, %c0_10, %c0_11] : memref<15x8x128xf32, #tpu.memory_space<vmem>>, vector<1x8x128xf32>
    %11 = vector.shape_cast %10 : vector<1x8x128xf32> to vector<8x128xf32>
    %c6 = arith.constant 6 : index
    %c0_12 = arith.constant 0 : index
    %c0_13 = arith.constant 0 : index
    %12 = vector.load %arg1[%c6, %c0_12, %c0_13] : memref<15x8x128xf32, #tpu.memory_space<vmem>>, vector<1x8x128xf32>
    %13 = vector.shape_cast %12 : vector<1x8x128xf32> to vector<8x128xf32>
    %c7 = arith.constant 7 : index
    %c0_14 = arith.constant 0 : index
    %c0_15 = arith.constant 0 : index
    %14 = vector.load %arg1[%c7, %c0_14, %c0_15] : memref<15x8x128xf32, #tpu.memory_space<vmem>>, vector<1x8x128xf32>
    %15 = vector.shape_cast %14 : vector<1x8x128xf32> to vector<8x128xf32>
    %c8 = arith.constant 8 : index
    %c0_16 = arith.constant 0 : index
    %c0_17 = arith.constant 0 : index
    %16 = vector.load %arg1[%c8, %c0_16, %c0_17] : memref<15x8x128xf32, #tpu.memory_space<vmem>>, vector<1x8x128xf32>
    %17 = vector.shape_cast %16 : vector<1x8x128xf32> to vector<8x128xf32>
    %c9 = arith.constant 9 : index
    %c0_18 = arith.constant 0 : index
    %c0_19 = arith.constant 0 : index
    %18 = vector.load %arg1[%c9, %c0_18, %c0_19] : memref<15x8x128xf32, #tpu.memory_space<vmem>>, vector<1x8x128xf32>
    %19 = vector.shape_cast %18 : vector<1x8x128xf32> to vector<8x128xf32>
    %c10 = arith.constant 10 : index
    %c0_20 = arith.constant 0 : index
    %c0_21 = arith.constant 0 : index
    %20 = vector.load %arg1[%c10, %c0_20, %c0_21] : memref<15x8x128xf32, #tpu.memory_space<vmem>>, vector<1x8x128xf32>
    %21 = vector.shape_cast %20 : vector<1x8x128xf32> to vector<8x128xf32>
    %c11 = arith.constant 11 : index
    %c0_22 = arith.constant 0 : index
    %c0_23 = arith.constant 0 : index
    %22 = vector.load %arg1[%c11, %c0_22, %c0_23] : memref<15x8x128xf32, #tpu.memory_space<vmem>>, vector<1x8x128xf32>
    %23 = vector.shape_cast %22 : vector<1x8x128xf32> to vector<8x128xf32>
    %c12 = arith.constant 12 : index
    %c0_24 = arith.constant 0 : index
    %c0_25 = arith.constant 0 : index
    %24 = vector.load %arg1[%c12, %c0_24, %c0_25] : memref<15x8x128xf32, #tpu.memory_space<vmem>>, vector<1x8x128xf32>
    %25 = vector.shape_cast %24 : vector<1x8x128xf32> to vector<8x128xf32>
    %c13 = arith.constant 13 : index
    %c0_26 = arith.constant 0 : index
    %c0_27 = arith.constant 0 : index
    %26 = vector.load %arg1[%c13, %c0_26, %c0_27] : memref<15x8x128xf32, #tpu.memory_space<vmem>>, vector<1x8x128xf32>
    %27 = vector.shape_cast %26 : vector<1x8x128xf32> to vector<8x128xf32>
    %c14 = arith.constant 14 : index
    %c0_28 = arith.constant 0 : index
    %c0_29 = arith.constant 0 : index
    %28 = vector.load %arg1[%c14, %c0_28, %c0_29] : memref<15x8x128xf32, #tpu.memory_space<vmem>>, vector<1x8x128xf32>
    %29 = vector.shape_cast %28 : vector<1x8x128xf32> to vector<8x128xf32>
    %30 = arith.mulf %19, %1 : vector<8x128xf32>
    %31 = arith.mulf %21, %7 : vector<8x128xf32>
    %32 = arith.addf %30, %31 : vector<8x128xf32>
    %33 = arith.mulf %23, %13 : vector<8x128xf32>
    %34 = arith.addf %32, %33 : vector<8x128xf32>
    %35 = arith.mulf %19, %3 : vector<8x128xf32>
    %36 = arith.mulf %21, %9 : vector<8x128xf32>
    %37 = arith.addf %35, %36 : vector<8x128xf32>
    %38 = arith.mulf %23, %15 : vector<8x128xf32>
    %39 = arith.addf %37, %38 : vector<8x128xf32>
    %40 = arith.mulf %19, %5 : vector<8x128xf32>
    %41 = arith.mulf %21, %11 : vector<8x128xf32>
    %42 = arith.addf %40, %41 : vector<8x128xf32>
    %43 = arith.mulf %23, %17 : vector<8x128xf32>
    %44 = arith.addf %42, %43 : vector<8x128xf32>
    %45 = arith.mulf %25, %1 : vector<8x128xf32>
    %46 = arith.mulf %27, %7 : vector<8x128xf32>
    %47 = arith.addf %45, %46 : vector<8x128xf32>
    %48 = arith.mulf %29, %13 : vector<8x128xf32>
    %49 = arith.addf %47, %48 : vector<8x128xf32>
    %50 = arith.mulf %25, %3 : vector<8x128xf32>
    %51 = arith.mulf %27, %9 : vector<8x128xf32>
    %52 = arith.addf %50, %51 : vector<8x128xf32>
    %53 = arith.mulf %29, %15 : vector<8x128xf32>
    %54 = arith.addf %52, %53 : vector<8x128xf32>
    %55 = arith.mulf %25, %5 : vector<8x128xf32>
    %56 = arith.mulf %27, %11 : vector<8x128xf32>
    %57 = arith.addf %55, %56 : vector<8x128xf32>
    %58 = arith.mulf %29, %17 : vector<8x128xf32>
    %59 = arith.addf %57, %58 : vector<8x128xf32>
    %60 = arith.mulf %34, %34 : vector<8x128xf32>
    %61 = arith.mulf %39, %39 : vector<8x128xf32>
    %62 = arith.addf %60, %61 : vector<8x128xf32>
    %63 = arith.mulf %44, %44 : vector<8x128xf32>
    %64 = arith.addf %62, %63 : vector<8x128xf32>
    %65 = arith.mulf %49, %49 : vector<8x128xf32>
    %66 = arith.mulf %54, %54 : vector<8x128xf32>
    %67 = arith.addf %65, %66 : vector<8x128xf32>
    %68 = arith.mulf %59, %59 : vector<8x128xf32>
    %69 = arith.addf %67, %68 : vector<8x128xf32>
    %70 = arith.mulf %34, %49 : vector<8x128xf32>
    %71 = arith.mulf %39, %54 : vector<8x128xf32>
    %72 = arith.addf %70, %71 : vector<8x128xf32>
    %73 = arith.mulf %44, %59 : vector<8x128xf32>
    %74 = arith.addf %72, %73 : vector<8x128xf32>
    %75 = math.rsqrt %64 : vector<8x128xf32>
    %76 = math.rsqrt %69 : vector<8x128xf32>
    %77 = arith.mulf %75, %75 : vector<8x128xf32>
    %78 = arith.mulf %76, %76 : vector<8x128xf32>
    %79 = arith.mulf %75, %76 : vector<8x128xf32>
    %80 = arith.mulf %74, %79 : vector<8x128xf32>
    %81 = arith.mulf %80, %80 : vector<8x128xf32>
    %cst = arith.constant 1.000000e+00 : f32
    %82 = vector.broadcast %cst : f32 to vector<8x128xf32>
    %83 = arith.subf %82, %81 : vector<8x128xf32>
    %cst_30 = arith.constant 9.99999996E-13 : f32
    %84 = vector.broadcast %cst_30 : f32 to vector<8x128xf32>
    %85 = arith.maximumf %83, %84 : vector<8x128xf32>
    %86 = math.rsqrt %85 : vector<8x128xf32>
    %87 = arith.mulf %64, %69 : vector<8x128xf32>
    %88 = arith.mulf %74, %74 : vector<8x128xf32>
    %89 = arith.subf %87, %88 : vector<8x128xf32>
    %cst_31 = arith.constant 9.99999996E-13 : f32
    %90 = vector.broadcast %cst_31 : f32 to vector<8x128xf32>
    %91 = arith.maximumf %89, %90 : vector<8x128xf32>
    %92 = math.rsqrt %91 : vector<8x128xf32>
    %93 = arith.mulf %34, %75 : vector<8x128xf32>
    %94 = arith.mulf %39, %75 : vector<8x128xf32>
    %95 = arith.mulf %44, %75 : vector<8x128xf32>
    %96 = arith.mulf %49, %76 : vector<8x128xf32>
    %97 = arith.mulf %54, %76 : vector<8x128xf32>
    %98 = arith.mulf %59, %76 : vector<8x128xf32>
    %cst_32 = arith.constant 0.000000e+00 : f32
    %99 = vector.broadcast %cst_32 : f32 to vector<8x128xf32>
    %100 = arith.subf %99, %86 : vector<8x128xf32>
    %101 = arith.mulf %100, %79 : vector<8x128xf32>
    %102 = arith.mulf %80, %86 : vector<8x128xf32>
    %103 = arith.mulf %102, %77 : vector<8x128xf32>
    %104 = arith.mulf %102, %78 : vector<8x128xf32>
    %105 = arith.mulf %101, %49 : vector<8x128xf32>
    %106 = arith.mulf %103, %34 : vector<8x128xf32>
    %107 = arith.addf %105, %106 : vector<8x128xf32>
    %108 = arith.mulf %101, %54 : vector<8x128xf32>
    %109 = arith.mulf %103, %39 : vector<8x128xf32>
    %110 = arith.addf %108, %109 : vector<8x128xf32>
    %111 = arith.mulf %101, %59 : vector<8x128xf32>
    %112 = arith.mulf %103, %44 : vector<8x128xf32>
    %113 = arith.addf %111, %112 : vector<8x128xf32>
    %114 = arith.mulf %101, %34 : vector<8x128xf32>
    %115 = arith.mulf %104, %49 : vector<8x128xf32>
    %116 = arith.addf %114, %115 : vector<8x128xf32>
    %117 = arith.mulf %101, %39 : vector<8x128xf32>
    %118 = arith.mulf %104, %54 : vector<8x128xf32>
    %119 = arith.addf %117, %118 : vector<8x128xf32>
    %120 = arith.mulf %101, %44 : vector<8x128xf32>
    %121 = arith.mulf %104, %59 : vector<8x128xf32>
    %122 = arith.addf %120, %121 : vector<8x128xf32>
    %123 = arith.mulf %92, %69 : vector<8x128xf32>
    %124 = arith.mulf %92, %64 : vector<8x128xf32>
    %cst_33 = arith.constant 0.000000e+00 : f32
    %125 = vector.broadcast %cst_33 : f32 to vector<8x128xf32>
    %126 = arith.subf %125, %92 : vector<8x128xf32>
    %127 = arith.mulf %126, %74 : vector<8x128xf32>
    %128 = arith.mulf %123, %34 : vector<8x128xf32>
    %129 = arith.mulf %127, %49 : vector<8x128xf32>
    %130 = arith.addf %128, %129 : vector<8x128xf32>
    %131 = arith.mulf %123, %39 : vector<8x128xf32>
    %132 = arith.mulf %127, %54 : vector<8x128xf32>
    %133 = arith.addf %131, %132 : vector<8x128xf32>
    %134 = arith.mulf %123, %44 : vector<8x128xf32>
    %135 = arith.mulf %127, %59 : vector<8x128xf32>
    %136 = arith.addf %134, %135 : vector<8x128xf32>
    %137 = arith.mulf %127, %34 : vector<8x128xf32>
    %138 = arith.mulf %124, %49 : vector<8x128xf32>
    %139 = arith.addf %137, %138 : vector<8x128xf32>
    %140 = arith.mulf %127, %39 : vector<8x128xf32>
    %141 = arith.mulf %124, %54 : vector<8x128xf32>
    %142 = arith.addf %140, %141 : vector<8x128xf32>
    %143 = arith.mulf %127, %44 : vector<8x128xf32>
    %144 = arith.mulf %124, %59 : vector<8x128xf32>
    %145 = arith.addf %143, %144 : vector<8x128xf32>
    %146 = arith.mulf %34, %34 : vector<8x128xf32>
    %147 = arith.mulf %49, %49 : vector<8x128xf32>
    %148 = arith.mulf %34, %49 : vector<8x128xf32>
    %cst_34 = arith.constant 2.000000e+00 : f32
    %149 = vector.broadcast %cst_34 : f32 to vector<8x128xf32>
    %150 = arith.mulf %149, %148 : vector<8x128xf32>
    %151 = arith.mulf %34, %39 : vector<8x128xf32>
    %152 = arith.mulf %49, %54 : vector<8x128xf32>
    %153 = arith.mulf %34, %54 : vector<8x128xf32>
    %154 = arith.mulf %39, %49 : vector<8x128xf32>
    %155 = arith.addf %153, %154 : vector<8x128xf32>
    %156 = arith.mulf %34, %44 : vector<8x128xf32>
    %157 = arith.mulf %49, %59 : vector<8x128xf32>
    %158 = arith.mulf %34, %59 : vector<8x128xf32>
    %159 = arith.mulf %44, %49 : vector<8x128xf32>
    %160 = arith.addf %158, %159 : vector<8x128xf32>
    %161 = arith.mulf %39, %39 : vector<8x128xf32>
    %162 = arith.mulf %54, %54 : vector<8x128xf32>
    %163 = arith.mulf %39, %54 : vector<8x128xf32>
    %cst_35 = arith.constant 2.000000e+00 : f32
    %164 = vector.broadcast %cst_35 : f32 to vector<8x128xf32>
    %165 = arith.mulf %164, %163 : vector<8x128xf32>
    %166 = arith.mulf %39, %44 : vector<8x128xf32>
    %167 = arith.mulf %54, %59 : vector<8x128xf32>
    %168 = arith.mulf %39, %59 : vector<8x128xf32>
    %169 = arith.mulf %44, %54 : vector<8x128xf32>
    %170 = arith.addf %168, %169 : vector<8x128xf32>
    %171 = arith.mulf %44, %44 : vector<8x128xf32>
    %172 = arith.mulf %59, %59 : vector<8x128xf32>
    %173 = arith.mulf %44, %59 : vector<8x128xf32>
    %cst_36 = arith.constant 2.000000e+00 : f32
    %174 = vector.broadcast %cst_36 : f32 to vector<8x128xf32>
    %175 = arith.mulf %174, %173 : vector<8x128xf32>
    %176 = arith.mulf %19, %93 : vector<8x128xf32>
    %177 = arith.mulf %19, %94 : vector<8x128xf32>
    %178 = arith.mulf %19, %95 : vector<8x128xf32>
    %179 = arith.mulf %21, %93 : vector<8x128xf32>
    %180 = arith.mulf %21, %94 : vector<8x128xf32>
    %181 = arith.mulf %21, %95 : vector<8x128xf32>
    %182 = arith.mulf %23, %93 : vector<8x128xf32>
    %183 = arith.mulf %23, %94 : vector<8x128xf32>
    %184 = arith.mulf %23, %95 : vector<8x128xf32>
    %c0_37 = arith.constant 0 : index
    %c0_38 = arith.constant 0 : index
    %c0_39 = arith.constant 0 : index
    %185 = vector.load %arg2[%c0_37, %c0_38, %c0_39] : memref<72x8x128xf32, #tpu.memory_space<vmem>>, vector<1x8x128xf32>
    %186 = vector.shape_cast %185 : vector<1x8x128xf32> to vector<8x128xf32>
    %187 = vector.shape_cast %176 : vector<8x128xf32> to vector<1x8x128xf32>
    tpu.vector_store %arg2[%c0_37, %c0_38, %c0_39], %187 {strides = array<i32>} : memref<72x8x128xf32, #tpu.memory_space<vmem>>, vector<1x8x128xf32>,
    %c1_40 = arith.constant 1 : index
    %c0_41 = arith.constant 0 : index
    %c0_42 = arith.constant 0 : index
    %188 = vector.load %arg2[%c1_40, %c0_41, %c0_42] : memref<72x8x128xf32, #tpu.memory_space<vmem>>, vector<1x8x128xf32>
    %189 = vector.shape_cast %188 : vector<1x8x128xf32> to vector<8x128xf32>
    %190 = vector.shape_cast %177 : vector<8x128xf32> to vector<1x8x128xf32>
    tpu.vector_store %arg2[%c1_40, %c0_41, %c0_42], %190 {strides = array<i32>} : memref<72x8x128xf32, #tpu.memory_space<vmem>>, vector<1x8x128xf32>,
    %c2_43 = arith.constant 2 : index
    %c0_44 = arith.constant 0 : index
    %c0_45 = arith.constant 0 : index
    %191 = vector.load %arg2[%c2_43, %c0_44, %c0_45] : memref<72x8x128xf32, #tpu.memory_space<vmem>>, vector<1x8x128xf32>
    %192 = vector.shape_cast %191 : vector<1x8x128xf32> to vector<8x128xf32>
    %193 = vector.shape_cast %178 : vector<8x128xf32> to vector<1x8x128xf32>
    tpu.vector_store %arg2[%c2_43, %c0_44, %c0_45], %193 {strides = array<i32>} : memref<72x8x128xf32, #tpu.memory_space<vmem>>, vector<1x8x128xf32>,
    %c3_46 = arith.constant 3 : index
    %c0_47 = arith.constant 0 : index
    %c0_48 = arith.constant 0 : index
    %194 = vector.load %arg2[%c3_46, %c0_47, %c0_48] : memref<72x8x128xf32, #tpu.memory_space<vmem>>, vector<1x8x128xf32>
    %195 = vector.shape_cast %194 : vector<1x8x128xf32> to vector<8x128xf32>
    %196 = vector.shape_cast %179 : vector<8x128xf32> to vector<1x8x128xf32>
    tpu.vector_store %arg2[%c3_46, %c0_47, %c0_48], %196 {strides = array<i32>} : memref<72x8x128xf32, #tpu.memory_space<vmem>>, vector<1x8x128xf32>,
    %c4_49 = arith.constant 4 : index
    %c0_50 = arith.constant 0 : index
    %c0_51 = arith.constant 0 : index
    %197 = vector.load %arg2[%c4_49, %c0_50, %c0_51] : memref<72x8x128xf32, #tpu.memory_space<vmem>>, vector<1x8x128xf32>
    %198 = vector.shape_cast %197 : vector<1x8x128xf32> to vector<8x128xf32>
    %199 = vector.shape_cast %180 : vector<8x128xf32> to vector<1x8x128xf32>
    tpu.vector_store %arg2[%c4_49, %c0_50, %c0_51], %199 {strides = array<i32>} : memref<72x8x128xf32, #tpu.memory_space<vmem>>, vector<1x8x128xf32>,
    %c5_52 = arith.constant 5 : index
    %c0_53 = arith.constant 0 : index
    %c0_54 = arith.constant 0 : index
    %200 = vector.load %arg2[%c5_52, %c0_53, %c0_54] : memref<72x8x128xf32, #tpu.memory_space<vmem>>, vector<1x8x128xf32>
    %201 = vector.shape_cast %200 : vector<1x8x128xf32> to vector<8x128xf32>
    %202 = vector.shape_cast %181 : vector<8x128xf32> to vector<1x8x128xf32>
    tpu.vector_store %arg2[%c5_52, %c0_53, %c0_54], %202 {strides = array<i32>} : memref<72x8x128xf32, #tpu.memory_space<vmem>>, vector<1x8x128xf32>,
    %c6_55 = arith.constant 6 : index
    %c0_56 = arith.constant 0 : index
    %c0_57 = arith.constant 0 : index
    %203 = vector.load %arg2[%c6_55, %c0_56, %c0_57] : memref<72x8x128xf32, #tpu.memory_space<vmem>>, vector<1x8x128xf32>
    %204 = vector.shape_cast %203 : vector<1x8x128xf32> to vector<8x128xf32>
    %205 = vector.shape_cast %182 : vector<8x128xf32> to vector<1x8x128xf32>
    tpu.vector_store %arg2[%c6_55, %c0_56, %c0_57], %205 {strides = array<i32>} : memref<72x8x128xf32, #tpu.memory_space<vmem>>, vector<1x8x128xf32>,
    %c7_58 = arith.constant 7 : index
    %c0_59 = arith.constant 0 : index
    %c0_60 = arith.constant 0 : index
    %206 = vector.load %arg2[%c7_58, %c0_59, %c0_60] : memref<72x8x128xf32, #tpu.memory_space<vmem>>, vector<1x8x128xf32>
    %207 = vector.shape_cast %206 : vector<1x8x128xf32> to vector<8x128xf32>
    %208 = vector.shape_cast %183 : vector<8x128xf32> to vector<1x8x128xf32>
    tpu.vector_store %arg2[%c7_58, %c0_59, %c0_60], %208 {strides = array<i32>} : memref<72x8x128xf32, #tpu.memory_space<vmem>>, vector<1x8x128xf32>,
    %c8_61 = arith.constant 8 : index
    %c0_62 = arith.constant 0 : index
    %c0_63 = arith.constant 0 : index
    %209 = vector.load %arg2[%c8_61, %c0_62, %c0_63] : memref<72x8x128xf32, #tpu.memory_space<vmem>>, vector<1x8x128xf32>
    %210 = vector.shape_cast %209 : vector<1x8x128xf32> to vector<8x128xf32>
    %211 = vector.shape_cast %184 : vector<8x128xf32> to vector<1x8x128xf32>
    tpu.vector_store %arg2[%c8_61, %c0_62, %c0_63], %211 {strides = array<i32>} : memref<72x8x128xf32, #tpu.memory_space<vmem>>, vector<1x8x128xf32>,
    %212 = arith.mulf %146, %75 : vector<8x128xf32>
    %213 = arith.mulf %151, %75 : vector<8x128xf32>
    %214 = arith.mulf %156, %75 : vector<8x128xf32>
    %215 = arith.mulf %151, %75 : vector<8x128xf32>
    %216 = arith.mulf %161, %75 : vector<8x128xf32>
    %217 = arith.mulf %166, %75 : vector<8x128xf32>
    %218 = arith.mulf %156, %75 : vector<8x128xf32>
    %219 = arith.mulf %166, %75 : vector<8x128xf32>
    %220 = arith.mulf %171, %75 : vector<8x128xf32>
    %c9_64 = arith.constant 9 : index
    %c0_65 = arith.constant 0 : index
    %c0_66 = arith.constant 0 : index
    %221 = vector.load %arg2[%c9_64, %c0_65, %c0_66] : memref<72x8x128xf32, #tpu.memory_space<vmem>>, vector<1x8x128xf32>
    %222 = vector.shape_cast %221 : vector<1x8x128xf32> to vector<8x128xf32>
    %223 = vector.shape_cast %212 : vector<8x128xf32> to vector<1x8x128xf32>
    tpu.vector_store %arg2[%c9_64, %c0_65, %c0_66], %223 {strides = array<i32>} : memref<72x8x128xf32, #tpu.memory_space<vmem>>, vector<1x8x128xf32>,
    %c10_67 = arith.constant 10 : index
    %c0_68 = arith.constant 0 : index
    %c0_69 = arith.constant 0 : index
    %224 = vector.load %arg2[%c10_67, %c0_68, %c0_69] : memref<72x8x128xf32, #tpu.memory_space<vmem>>, vector<1x8x128xf32>
    %225 = vector.shape_cast %224 : vector<1x8x128xf32> to vector<8x128xf32>
    %226 = vector.shape_cast %213 : vector<8x128xf32> to vector<1x8x128xf32>
    tpu.vector_store %arg2[%c10_67, %c0_68, %c0_69], %226 {strides = array<i32>} : memref<72x8x128xf32, #tpu.memory_space<vmem>>, vector<1x8x128xf32>,
    %c11_70 = arith.constant 11 : index
    %c0_71 = arith.constant 0 : index
    %c0_72 = arith.constant 0 : index
    %227 = vector.load %arg2[%c11_70, %c0_71, %c0_72] : memref<72x8x128xf32, #tpu.memory_space<vmem>>, vector<1x8x128xf32>
    %228 = vector.shape_cast %227 : vector<1x8x128xf32> to vector<8x128xf32>
    %229 = vector.shape_cast %214 : vector<8x128xf32> to vector<1x8x128xf32>
    tpu.vector_store %arg2[%c11_70, %c0_71, %c0_72], %229 {strides = array<i32>} : memref<72x8x128xf32, #tpu.memory_space<vmem>>, vector<1x8x128xf32>,
    %c12_73 = arith.constant 12 : index
    %c0_74 = arith.constant 0 : index
    %c0_75 = arith.constant 0 : index
    %230 = vector.load %arg2[%c12_73, %c0_74, %c0_75] : memref<72x8x128xf32, #tpu.memory_space<vmem>>, vector<1x8x128xf32>
    %231 = vector.shape_cast %230 : vector<1x8x128xf32> to vector<8x128xf32>
    %232 = vector.shape_cast %215 : vector<8x128xf32> to vector<1x8x128xf32>
    tpu.vector_store %arg2[%c12_73, %c0_74, %c0_75], %232 {strides = array<i32>} : memref<72x8x128xf32, #tpu.memory_space<vmem>>, vector<1x8x128xf32>,
    %c13_76 = arith.constant 13 : index
    %c0_77 = arith.constant 0 : index
    %c0_78 = arith.constant 0 : index
    %233 = vector.load %arg2[%c13_76, %c0_77, %c0_78] : memref<72x8x128xf32, #tpu.memory_space<vmem>>, vector<1x8x128xf32>
    %234 = vector.shape_cast %233 : vector<1x8x128xf32> to vector<8x128xf32>
    %235 = vector.shape_cast %216 : vector<8x128xf32> to vector<1x8x128xf32>
    tpu.vector_store %arg2[%c13_76, %c0_77, %c0_78], %235 {strides = array<i32>} : memref<72x8x128xf32, #tpu.memory_space<vmem>>, vector<1x8x128xf32>,
    %c14_79 = arith.constant 14 : index
    %c0_80 = arith.constant 0 : index
    %c0_81 = arith.constant 0 : index
    %236 = vector.load %arg2[%c14_79, %c0_80, %c0_81] : memref<72x8x128xf32, #tpu.memory_space<vmem>>, vector<1x8x128xf32>
    %237 = vector.shape_cast %236 : vector<1x8x128xf32> to vector<8x128xf32>
    %238 = vector.shape_cast %217 : vector<8x128xf32> to vector<1x8x128xf32>
    tpu.vector_store %arg2[%c14_79, %c0_80, %c0_81], %238 {strides = array<i32>} : memref<72x8x128xf32, #tpu.memory_space<vmem>>, vector<1x8x128xf32>,
    %c15 = arith.constant 15 : index
    %c0_82 = arith.constant 0 : index
    %c0_83 = arith.constant 0 : index
    %239 = vector.load %arg2[%c15, %c0_82, %c0_83] : memref<72x8x128xf32, #tpu.memory_space<vmem>>, vector<1x8x128xf32>
    %240 = vector.shape_cast %239 : vector<1x8x128xf32> to vector<8x128xf32>
    %241 = vector.shape_cast %218 : vector<8x128xf32> to vector<1x8x128xf32>
    tpu.vector_store %arg2[%c15, %c0_82, %c0_83], %241 {strides = array<i32>} : memref<72x8x128xf32, #tpu.memory_space<vmem>>, vector<1x8x128xf32>,
    %c16 = arith.constant 16 : index
    %c0_84 = arith.constant 0 : index
    %c0_85 = arith.constant 0 : index
    %242 = vector.load %arg2[%c16, %c0_84, %c0_85] : memref<72x8x128xf32, #tpu.memory_space<vmem>>, vector<1x8x128xf32>
    %243 = vector.shape_cast %242 : vector<1x8x128xf32> to vector<8x128xf32>
    %244 = vector.shape_cast %219 : vector<8x128xf32> to vector<1x8x128xf32>
    tpu.vector_store %arg2[%c16, %c0_84, %c0_85], %244 {strides = array<i32>} : memref<72x8x128xf32, #tpu.memory_space<vmem>>, vector<1x8x128xf32>,
    %c17 = arith.constant 17 : index
    %c0_86 = arith.constant 0 : index
    %c0_87 = arith.constant 0 : index
    %245 = vector.load %arg2[%c17, %c0_86, %c0_87] : memref<72x8x128xf32, #tpu.memory_space<vmem>>, vector<1x8x128xf32>
    %246 = vector.shape_cast %245 : vector<1x8x128xf32> to vector<8x128xf32>
    %247 = vector.shape_cast %220 : vector<8x128xf32> to vector<1x8x128xf32>
    tpu.vector_store %arg2[%c17, %c0_86, %c0_87], %247 {strides = array<i32>} : memref<72x8x128xf32, #tpu.memory_space<vmem>>, vector<1x8x128xf32>,
    %248 = arith.mulf %25, %96 : vector<8x128xf32>
    %249 = arith.mulf %25, %97 : vector<8x128xf32>
    %250 = arith.mulf %25, %98 : vector<8x128xf32>
    %251 = arith.mulf %27, %96 : vector<8x128xf32>
    %252 = arith.mulf %27, %97 : vector<8x128xf32>
    %253 = arith.mulf %27, %98 : vector<8x128xf32>
    %254 = arith.mulf %29, %96 : vector<8x128xf32>
    %255 = arith.mulf %29, %97 : vector<8x128xf32>
    %256 = arith.mulf %29, %98 : vector<8x128xf32>
    %c18 = arith.constant 18 : index
    %c0_88 = arith.constant 0 : index
    %c0_89 = arith.constant 0 : index
    %257 = vector.load %arg2[%c18, %c0_88, %c0_89] : memref<72x8x128xf32, #tpu.memory_space<vmem>>, vector<1x8x128xf32>
    %258 = vector.shape_cast %257 : vector<1x8x128xf32> to vector<8x128xf32>
    %259 = vector.shape_cast %248 : vector<8x128xf32> to vector<1x8x128xf32>
    tpu.vector_store %arg2[%c18, %c0_88, %c0_89], %259 {strides = array<i32>} : memref<72x8x128xf32, #tpu.memory_space<vmem>>, vector<1x8x128xf32>,
    %c19 = arith.constant 19 : index
    %c0_90 = arith.constant 0 : index
    %c0_91 = arith.constant 0 : index
    %260 = vector.load %arg2[%c19, %c0_90, %c0_91] : memref<72x8x128xf32, #tpu.memory_space<vmem>>, vector<1x8x128xf32>
    %261 = vector.shape_cast %260 : vector<1x8x128xf32> to vector<8x128xf32>
    %262 = vector.shape_cast %249 : vector<8x128xf32> to vector<1x8x128xf32>
    tpu.vector_store %arg2[%c19, %c0_90, %c0_91], %262 {strides = array<i32>} : memref<72x8x128xf32, #tpu.memory_space<vmem>>, vector<1x8x128xf32>,
    %c20 = arith.constant 20 : index
    %c0_92 = arith.constant 0 : index
    %c0_93 = arith.constant 0 : index
    %263 = vector.load %arg2[%c20, %c0_92, %c0_93] : memref<72x8x128xf32, #tpu.memory_space<vmem>>, vector<1x8x128xf32>
    %264 = vector.shape_cast %263 : vector<1x8x128xf32> to vector<8x128xf32>
    %265 = vector.shape_cast %250 : vector<8x128xf32> to vector<1x8x128xf32>
    tpu.vector_store %arg2[%c20, %c0_92, %c0_93], %265 {strides = array<i32>} : memref<72x8x128xf32, #tpu.memory_space<vmem>>, vector<1x8x128xf32>,
    %c21 = arith.constant 21 : index
    %c0_94 = arith.constant 0 : index
    %c0_95 = arith.constant 0 : index
    %266 = vector.load %arg2[%c21, %c0_94, %c0_95] : memref<72x8x128xf32, #tpu.memory_space<vmem>>, vector<1x8x128xf32>
    %267 = vector.shape_cast %266 : vector<1x8x128xf32> to vector<8x128xf32>
    %268 = vector.shape_cast %251 : vector<8x128xf32> to vector<1x8x128xf32>
    tpu.vector_store %arg2[%c21, %c0_94, %c0_95], %268 {strides = array<i32>} : memref<72x8x128xf32, #tpu.memory_space<vmem>>, vector<1x8x128xf32>,
    %c22 = arith.constant 22 : index
    %c0_96 = arith.constant 0 : index
    %c0_97 = arith.constant 0 : index
    %269 = vector.load %arg2[%c22, %c0_96, %c0_97] : memref<72x8x128xf32, #tpu.memory_space<vmem>>, vector<1x8x128xf32>
    %270 = vector.shape_cast %269 : vector<1x8x128xf32> to vector<8x128xf32>
    %271 = vector.shape_cast %252 : vector<8x128xf32> to vector<1x8x128xf32>
    tpu.vector_store %arg2[%c22, %c0_96, %c0_97], %271 {strides = array<i32>} : memref<72x8x128xf32, #tpu.memory_space<vmem>>, vector<1x8x128xf32>,
    %c23 = arith.constant 23 : index
    %c0_98 = arith.constant 0 : index
    %c0_99 = arith.constant 0 : index
    %272 = vector.load %arg2[%c23, %c0_98, %c0_99] : memref<72x8x128xf32, #tpu.memory_space<vmem>>, vector<1x8x128xf32>
    %273 = vector.shape_cast %272 : vector<1x8x128xf32> to vector<8x128xf32>
    %274 = vector.shape_cast %253 : vector<8x128xf32> to vector<1x8x128xf32>
    tpu.vector_store %arg2[%c23, %c0_98, %c0_99], %274 {strides = array<i32>} : memref<72x8x128xf32, #tpu.memory_space<vmem>>, vector<1x8x128xf32>,
    %c24 = arith.constant 24 : index
    %c0_100 = arith.constant 0 : index
    %c0_101 = arith.constant 0 : index
    %275 = vector.load %arg2[%c24, %c0_100, %c0_101] : memref<72x8x128xf32, #tpu.memory_space<vmem>>, vector<1x8x128xf32>
    %276 = vector.shape_cast %275 : vector<1x8x128xf32> to vector<8x128xf32>
    %277 = vector.shape_cast %254 : vector<8x128xf32> to vector<1x8x128xf32>
    tpu.vector_store %arg2[%c24, %c0_100, %c0_101], %277 {strides = array<i32>} : memref<72x8x128xf32, #tpu.memory_space<vmem>>, vector<1x8x128xf32>,
    %c25 = arith.constant 25 : index
    %c0_102 = arith.constant 0 : index
    %c0_103 = arith.constant 0 : index
    %278 = vector.load %arg2[%c25, %c0_102, %c0_103] : memref<72x8x128xf32, #tpu.memory_space<vmem>>, vector<1x8x128xf32>
    %279 = vector.shape_cast %278 : vector<1x8x128xf32> to vector<8x128xf32>
    %280 = vector.shape_cast %255 : vector<8x128xf32> to vector<1x8x128xf32>
    tpu.vector_store %arg2[%c25, %c0_102, %c0_103], %280 {strides = array<i32>} : memref<72x8x128xf32, #tpu.memory_space<vmem>>, vector<1x8x128xf32>,
    %c26 = arith.constant 26 : index
    %c0_104 = arith.constant 0 : index
    %c0_105 = arith.constant 0 : index
    %281 = vector.load %arg2[%c26, %c0_104, %c0_105] : memref<72x8x128xf32, #tpu.memory_space<vmem>>, vector<1x8x128xf32>
    %282 = vector.shape_cast %281 : vector<1x8x128xf32> to vector<8x128xf32>
    %283 = vector.shape_cast %256 : vector<8x128xf32> to vector<1x8x128xf32>
    tpu.vector_store %arg2[%c26, %c0_104, %c0_105], %283 {strides = array<i32>} : memref<72x8x128xf32, #tpu.memory_space<vmem>>, vector<1x8x128xf32>,
    %284 = arith.mulf %147, %76 : vector<8x128xf32>
    %285 = arith.mulf %152, %76 : vector<8x128xf32>
    %286 = arith.mulf %157, %76 : vector<8x128xf32>
    %287 = arith.mulf %152, %76 : vector<8x128xf32>
    %288 = arith.mulf %162, %76 : vector<8x128xf32>
    %289 = arith.mulf %167, %76 : vector<8x128xf32>
    %290 = arith.mulf %157, %76 : vector<8x128xf32>
    %291 = arith.mulf %167, %76 : vector<8x128xf32>
    %292 = arith.mulf %172, %76 : vector<8x128xf32>
    %c27 = arith.constant 27 : index
    %c0_106 = arith.constant 0 : index
    %c0_107 = arith.constant 0 : index
    %293 = vector.load %arg2[%c27, %c0_106, %c0_107] : memref<72x8x128xf32, #tpu.memory_space<vmem>>, vector<1x8x128xf32>
    %294 = vector.shape_cast %293 : vector<1x8x128xf32> to vector<8x128xf32>
    %295 = vector.shape_cast %284 : vector<8x128xf32> to vector<1x8x128xf32>
    tpu.vector_store %arg2[%c27, %c0_106, %c0_107], %295 {strides = array<i32>} : memref<72x8x128xf32, #tpu.memory_space<vmem>>, vector<1x8x128xf32>,
    %c28 = arith.constant 28 : index
    %c0_108 = arith.constant 0 : index
    %c0_109 = arith.constant 0 : index
    %296 = vector.load %arg2[%c28, %c0_108, %c0_109] : memref<72x8x128xf32, #tpu.memory_space<vmem>>, vector<1x8x128xf32>
    %297 = vector.shape_cast %296 : vector<1x8x128xf32> to vector<8x128xf32>
    %298 = vector.shape_cast %285 : vector<8x128xf32> to vector<1x8x128xf32>
    tpu.vector_store %arg2[%c28, %c0_108, %c0_109], %298 {strides = array<i32>} : memref<72x8x128xf32, #tpu.memory_space<vmem>>, vector<1x8x128xf32>,
    %c29 = arith.constant 29 : index
    %c0_110 = arith.constant 0 : index
    %c0_111 = arith.constant 0 : index
    %299 = vector.load %arg2[%c29, %c0_110, %c0_111] : memref<72x8x128xf32, #tpu.memory_space<vmem>>, vector<1x8x128xf32>
    %300 = vector.shape_cast %299 : vector<1x8x128xf32> to vector<8x128xf32>
    %301 = vector.shape_cast %286 : vector<8x128xf32> to vector<1x8x128xf32>
    tpu.vector_store %arg2[%c29, %c0_110, %c0_111], %301 {strides = array<i32>} : memref<72x8x128xf32, #tpu.memory_space<vmem>>, vector<1x8x128xf32>,
    %c30 = arith.constant 30 : index
    %c0_112 = arith.constant 0 : index
    %c0_113 = arith.constant 0 : index
    %302 = vector.load %arg2[%c30, %c0_112, %c0_113] : memref<72x8x128xf32, #tpu.memory_space<vmem>>, vector<1x8x128xf32>
    %303 = vector.shape_cast %302 : vector<1x8x128xf32> to vector<8x128xf32>
    %304 = vector.shape_cast %287 : vector<8x128xf32> to vector<1x8x128xf32>
    tpu.vector_store %arg2[%c30, %c0_112, %c0_113], %304 {strides = array<i32>} : memref<72x8x128xf32, #tpu.memory_space<vmem>>, vector<1x8x128xf32>,
    %c31 = arith.constant 31 : index
    %c0_114 = arith.constant 0 : index
    %c0_115 = arith.constant 0 : index
    %305 = vector.load %arg2[%c31, %c0_114, %c0_115] : memref<72x8x128xf32, #tpu.memory_space<vmem>>, vector<1x8x128xf32>
    %306 = vector.shape_cast %305 : vector<1x8x128xf32> to vector<8x128xf32>
    %307 = vector.shape_cast %288 : vector<8x128xf32> to vector<1x8x128xf32>
    tpu.vector_store %arg2[%c31, %c0_114, %c0_115], %307 {strides = array<i32>} : memref<72x8x128xf32, #tpu.memory_space<vmem>>, vector<1x8x128xf32>,
    %c32 = arith.constant 32 : index
    %c0_116 = arith.constant 0 : index
    %c0_117 = arith.constant 0 : index
    %308 = vector.load %arg2[%c32, %c0_116, %c0_117] : memref<72x8x128xf32, #tpu.memory_space<vmem>>, vector<1x8x128xf32>
    %309 = vector.shape_cast %308 : vector<1x8x128xf32> to vector<8x128xf32>
    %310 = vector.shape_cast %289 : vector<8x128xf32> to vector<1x8x128xf32>
    tpu.vector_store %arg2[%c32, %c0_116, %c0_117], %310 {strides = array<i32>} : memref<72x8x128xf32, #tpu.memory_space<vmem>>, vector<1x8x128xf32>,
    %c33 = arith.constant 33 : index
    %c0_118 = arith.constant 0 : index
    %c0_119 = arith.constant 0 : index
    %311 = vector.load %arg2[%c33, %c0_118, %c0_119] : memref<72x8x128xf32, #tpu.memory_space<vmem>>, vector<1x8x128xf32>
    %312 = vector.shape_cast %311 : vector<1x8x128xf32> to vector<8x128xf32>
    %313 = vector.shape_cast %290 : vector<8x128xf32> to vector<1x8x128xf32>
    tpu.vector_store %arg2[%c33, %c0_118, %c0_119], %313 {strides = array<i32>} : memref<72x8x128xf32, #tpu.memory_space<vmem>>, vector<1x8x128xf32>,
    %c34 = arith.constant 34 : index
    %c0_120 = arith.constant 0 : index
    %c0_121 = arith.constant 0 : index
    %314 = vector.load %arg2[%c34, %c0_120, %c0_121] : memref<72x8x128xf32, #tpu.memory_space<vmem>>, vector<1x8x128xf32>
    %315 = vector.shape_cast %314 : vector<1x8x128xf32> to vector<8x128xf32>
    %316 = vector.shape_cast %291 : vector<8x128xf32> to vector<1x8x128xf32>
    tpu.vector_store %arg2[%c34, %c0_120, %c0_121], %316 {strides = array<i32>} : memref<72x8x128xf32, #tpu.memory_space<vmem>>, vector<1x8x128xf32>,
    %c35 = arith.constant 35 : index
    %c0_122 = arith.constant 0 : index
    %c0_123 = arith.constant 0 : index
    %317 = vector.load %arg2[%c35, %c0_122, %c0_123] : memref<72x8x128xf32, #tpu.memory_space<vmem>>, vector<1x8x128xf32>
    %318 = vector.shape_cast %317 : vector<1x8x128xf32> to vector<8x128xf32>
    %319 = vector.shape_cast %292 : vector<8x128xf32> to vector<1x8x128xf32>
    tpu.vector_store %arg2[%c35, %c0_122, %c0_123], %319 {strides = array<i32>} : memref<72x8x128xf32, #tpu.memory_space<vmem>>, vector<1x8x128xf32>,
    %320 = arith.mulf %19, %107 : vector<8x128xf32>
    %321 = arith.mulf %25, %116 : vector<8x128xf32>
    %322 = arith.addf %320, %321 : vector<8x128xf32>
    %323 = arith.mulf %19, %110 : vector<8x128xf32>
    %324 = arith.mulf %25, %119 : vector<8x128xf32>
    %325 = arith.addf %323, %324 : vector<8x128xf32>
    %326 = arith.mulf %19, %113 : vector<8x128xf32>
    %327 = arith.mulf %25, %122 : vector<8x128xf32>
    %328 = arith.addf %326, %327 : vector<8x128xf32>
    %329 = arith.mulf %21, %107 : vector<8x128xf32>
    %330 = arith.mulf %27, %116 : vector<8x128xf32>
    %331 = arith.addf %329, %330 : vector<8x128xf32>
    %332 = arith.mulf %21, %110 : vector<8x128xf32>
    %333 = arith.mulf %27, %119 : vector<8x128xf32>
    %334 = arith.addf %332, %333 : vector<8x128xf32>
    %335 = arith.mulf %21, %113 : vector<8x128xf32>
    %336 = arith.mulf %27, %122 : vector<8x128xf32>
    %337 = arith.addf %335, %336 : vector<8x128xf32>
    %338 = arith.mulf %23, %107 : vector<8x128xf32>
    %339 = arith.mulf %29, %116 : vector<8x128xf32>
    %340 = arith.addf %338, %339 : vector<8x128xf32>
    %341 = arith.mulf %23, %110 : vector<8x128xf32>
    %342 = arith.mulf %29, %119 : vector<8x128xf32>
    %343 = arith.addf %341, %342 : vector<8x128xf32>
    %344 = arith.mulf %23, %113 : vector<8x128xf32>
    %345 = arith.mulf %29, %122 : vector<8x128xf32>
    %346 = arith.addf %344, %345 : vector<8x128xf32>
    %c36 = arith.constant 36 : index
    %c0_124 = arith.constant 0 : index
    %c0_125 = arith.constant 0 : index
    %347 = vector.load %arg2[%c36, %c0_124, %c0_125] : memref<72x8x128xf32, #tpu.memory_space<vmem>>, vector<1x8x128xf32>
    %348 = vector.shape_cast %347 : vector<1x8x128xf32> to vector<8x128xf32>
    %349 = vector.shape_cast %322 : vector<8x128xf32> to vector<1x8x128xf32>
    tpu.vector_store %arg2[%c36, %c0_124, %c0_125], %349 {strides = array<i32>} : memref<72x8x128xf32, #tpu.memory_space<vmem>>, vector<1x8x128xf32>,
    %c37 = arith.constant 37 : index
    %c0_126 = arith.constant 0 : index
    %c0_127 = arith.constant 0 : index
    %350 = vector.load %arg2[%c37, %c0_126, %c0_127] : memref<72x8x128xf32, #tpu.memory_space<vmem>>, vector<1x8x128xf32>
    %351 = vector.shape_cast %350 : vector<1x8x128xf32> to vector<8x128xf32>
    %352 = vector.shape_cast %325 : vector<8x128xf32> to vector<1x8x128xf32>
    tpu.vector_store %arg2[%c37, %c0_126, %c0_127], %352 {strides = array<i32>} : memref<72x8x128xf32, #tpu.memory_space<vmem>>, vector<1x8x128xf32>,
    %c38 = arith.constant 38 : index
    %c0_128 = arith.constant 0 : index
    %c0_129 = arith.constant 0 : index
    %353 = vector.load %arg2[%c38, %c0_128, %c0_129] : memref<72x8x128xf32, #tpu.memory_space<vmem>>, vector<1x8x128xf32>
    %354 = vector.shape_cast %353 : vector<1x8x128xf32> to vector<8x128xf32>
    %355 = vector.shape_cast %328 : vector<8x128xf32> to vector<1x8x128xf32>
    tpu.vector_store %arg2[%c38, %c0_128, %c0_129], %355 {strides = array<i32>} : memref<72x8x128xf32, #tpu.memory_space<vmem>>, vector<1x8x128xf32>,
    %c39 = arith.constant 39 : index
    %c0_130 = arith.constant 0 : index
    %c0_131 = arith.constant 0 : index
    %356 = vector.load %arg2[%c39, %c0_130, %c0_131] : memref<72x8x128xf32, #tpu.memory_space<vmem>>, vector<1x8x128xf32>
    %357 = vector.shape_cast %356 : vector<1x8x128xf32> to vector<8x128xf32>
    %358 = vector.shape_cast %331 : vector<8x128xf32> to vector<1x8x128xf32>
    tpu.vector_store %arg2[%c39, %c0_130, %c0_131], %358 {strides = array<i32>} : memref<72x8x128xf32, #tpu.memory_space<vmem>>, vector<1x8x128xf32>,
    %c40 = arith.constant 40 : index
    %c0_132 = arith.constant 0 : index
    %c0_133 = arith.constant 0 : index
    %359 = vector.load %arg2[%c40, %c0_132, %c0_133] : memref<72x8x128xf32, #tpu.memory_space<vmem>>, vector<1x8x128xf32>
    %360 = vector.shape_cast %359 : vector<1x8x128xf32> to vector<8x128xf32>
    %361 = vector.shape_cast %334 : vector<8x128xf32> to vector<1x8x128xf32>
    tpu.vector_store %arg2[%c40, %c0_132, %c0_133], %361 {strides = array<i32>} : memref<72x8x128xf32, #tpu.memory_space<vmem>>, vector<1x8x128xf32>,
    %c41 = arith.constant 41 : index
    %c0_134 = arith.constant 0 : index
    %c0_135 = arith.constant 0 : index
    %362 = vector.load %arg2[%c41, %c0_134, %c0_135] : memref<72x8x128xf32, #tpu.memory_space<vmem>>, vector<1x8x128xf32>
    %363 = vector.shape_cast %362 : vector<1x8x128xf32> to vector<8x128xf32>
    %364 = vector.shape_cast %337 : vector<8x128xf32> to vector<1x8x128xf32>
    tpu.vector_store %arg2[%c41, %c0_134, %c0_135], %364 {strides = array<i32>} : memref<72x8x128xf32, #tpu.memory_space<vmem>>, vector<1x8x128xf32>,
    %c42 = arith.constant 42 : index
    %c0_136 = arith.constant 0 : index
    %c0_137 = arith.constant 0 : index
    %365 = vector.load %arg2[%c42, %c0_136, %c0_137] : memref<72x8x128xf32, #tpu.memory_space<vmem>>, vector<1x8x128xf32>
    %366 = vector.shape_cast %365 : vector<1x8x128xf32> to vector<8x128xf32>
    %367 = vector.shape_cast %340 : vector<8x128xf32> to vector<1x8x128xf32>
    tpu.vector_store %arg2[%c42, %c0_136, %c0_137], %367 {strides = array<i32>} : memref<72x8x128xf32, #tpu.memory_space<vmem>>, vector<1x8x128xf32>,
    %c43 = arith.constant 43 : index
    %c0_138 = arith.constant 0 : index
    %c0_139 = arith.constant 0 : index
    %368 = vector.load %arg2[%c43, %c0_138, %c0_139] : memref<72x8x128xf32, #tpu.memory_space<vmem>>, vector<1x8x128xf32>
    %369 = vector.shape_cast %368 : vector<1x8x128xf32> to vector<8x128xf32>
    %370 = vector.shape_cast %343 : vector<8x128xf32> to vector<1x8x128xf32>
    tpu.vector_store %arg2[%c43, %c0_138, %c0_139], %370 {strides = array<i32>} : memref<72x8x128xf32, #tpu.memory_space<vmem>>, vector<1x8x128xf32>,
    %c44 = arith.constant 44 : index
    %c0_140 = arith.constant 0 : index
    %c0_141 = arith.constant 0 : index
    %371 = vector.load %arg2[%c44, %c0_140, %c0_141] : memref<72x8x128xf32, #tpu.memory_space<vmem>>, vector<1x8x128xf32>
    %372 = vector.shape_cast %371 : vector<1x8x128xf32> to vector<8x128xf32>
    %373 = vector.shape_cast %346 : vector<8x128xf32> to vector<1x8x128xf32>
    tpu.vector_store %arg2[%c44, %c0_140, %c0_141], %373 {strides = array<i32>} : memref<72x8x128xf32, #tpu.memory_space<vmem>>, vector<1x8x128xf32>,
    %374 = arith.mulf %101, %150 : vector<8x128xf32>
    %375 = arith.mulf %103, %146 : vector<8x128xf32>
    %376 = arith.addf %374, %375 : vector<8x128xf32>
    %377 = arith.mulf %104, %147 : vector<8x128xf32>
    %378 = arith.addf %376, %377 : vector<8x128xf32>
    %379 = arith.mulf %101, %155 : vector<8x128xf32>
    %380 = arith.mulf %103, %151 : vector<8x128xf32>
    %381 = arith.addf %379, %380 : vector<8x128xf32>
    %382 = arith.mulf %104, %152 : vector<8x128xf32>
    %383 = arith.addf %381, %382 : vector<8x128xf32>
    %384 = arith.mulf %101, %160 : vector<8x128xf32>
    %385 = arith.mulf %103, %156 : vector<8x128xf32>
    %386 = arith.addf %384, %385 : vector<8x128xf32>
    %387 = arith.mulf %104, %157 : vector<8x128xf32>
    %388 = arith.addf %386, %387 : vector<8x128xf32>
    %389 = arith.mulf %101, %155 : vector<8x128xf32>
    %390 = arith.mulf %103, %151 : vector<8x128xf32>
    %391 = arith.addf %389, %390 : vector<8x128xf32>
    %392 = arith.mulf %104, %152 : vector<8x128xf32>
    %393 = arith.addf %391, %392 : vector<8x128xf32>
    %394 = arith.mulf %101, %165 : vector<8x128xf32>
    %395 = arith.mulf %103, %161 : vector<8x128xf32>
    %396 = arith.addf %394, %395 : vector<8x128xf32>
    %397 = arith.mulf %104, %162 : vector<8x128xf32>
    %398 = arith.addf %396, %397 : vector<8x128xf32>
    %399 = arith.mulf %101, %170 : vector<8x128xf32>
    %400 = arith.mulf %103, %166 : vector<8x128xf32>
    %401 = arith.addf %399, %400 : vector<8x128xf32>
    %402 = arith.mulf %104, %167 : vector<8x128xf32>
    %403 = arith.addf %401, %402 : vector<8x128xf32>
    %404 = arith.mulf %101, %160 : vector<8x128xf32>
    %405 = arith.mulf %103, %156 : vector<8x128xf32>
    %406 = arith.addf %404, %405 : vector<8x128xf32>
    %407 = arith.mulf %104, %157 : vector<8x128xf32>
    %408 = arith.addf %406, %407 : vector<8x128xf32>
    %409 = arith.mulf %101, %170 : vector<8x128xf32>
    %410 = arith.mulf %103, %166 : vector<8x128xf32>
    %411 = arith.addf %409, %410 : vector<8x128xf32>
    %412 = arith.mulf %104, %167 : vector<8x128xf32>
    %413 = arith.addf %411, %412 : vector<8x128xf32>
    %414 = arith.mulf %101, %175 : vector<8x128xf32>
    %415 = arith.mulf %103, %171 : vector<8x128xf32>
    %416 = arith.addf %414, %415 : vector<8x128xf32>
    %417 = arith.mulf %104, %172 : vector<8x128xf32>
    %418 = arith.addf %416, %417 : vector<8x128xf32>
    %c45 = arith.constant 45 : index
    %c0_142 = arith.constant 0 : index
    %c0_143 = arith.constant 0 : index
    %419 = vector.load %arg2[%c45, %c0_142, %c0_143] : memref<72x8x128xf32, #tpu.memory_space<vmem>>, vector<1x8x128xf32>
    %420 = vector.shape_cast %419 : vector<1x8x128xf32> to vector<8x128xf32>
    %421 = vector.shape_cast %378 : vector<8x128xf32> to vector<1x8x128xf32>
    tpu.vector_store %arg2[%c45, %c0_142, %c0_143], %421 {strides = array<i32>} : memref<72x8x128xf32, #tpu.memory_space<vmem>>, vector<1x8x128xf32>,
    %c46 = arith.constant 46 : index
    %c0_144 = arith.constant 0 : index
    %c0_145 = arith.constant 0 : index
    %422 = vector.load %arg2[%c46, %c0_144, %c0_145] : memref<72x8x128xf32, #tpu.memory_space<vmem>>, vector<1x8x128xf32>
    %423 = vector.shape_cast %422 : vector<1x8x128xf32> to vector<8x128xf32>
    %424 = vector.shape_cast %383 : vector<8x128xf32> to vector<1x8x128xf32>
    tpu.vector_store %arg2[%c46, %c0_144, %c0_145], %424 {strides = array<i32>} : memref<72x8x128xf32, #tpu.memory_space<vmem>>, vector<1x8x128xf32>,
    %c47 = arith.constant 47 : index
    %c0_146 = arith.constant 0 : index
    %c0_147 = arith.constant 0 : index
    %425 = vector.load %arg2[%c47, %c0_146, %c0_147] : memref<72x8x128xf32, #tpu.memory_space<vmem>>, vector<1x8x128xf32>
    %426 = vector.shape_cast %425 : vector<1x8x128xf32> to vector<8x128xf32>
    %427 = vector.shape_cast %388 : vector<8x128xf32> to vector<1x8x128xf32>
    tpu.vector_store %arg2[%c47, %c0_146, %c0_147], %427 {strides = array<i32>} : memref<72x8x128xf32, #tpu.memory_space<vmem>>, vector<1x8x128xf32>,
    %c48 = arith.constant 48 : index
    %c0_148 = arith.constant 0 : index
    %c0_149 = arith.constant 0 : index
    %428 = vector.load %arg2[%c48, %c0_148, %c0_149] : memref<72x8x128xf32, #tpu.memory_space<vmem>>, vector<1x8x128xf32>
    %429 = vector.shape_cast %428 : vector<1x8x128xf32> to vector<8x128xf32>
    %430 = vector.shape_cast %393 : vector<8x128xf32> to vector<1x8x128xf32>
    tpu.vector_store %arg2[%c48, %c0_148, %c0_149], %430 {strides = array<i32>} : memref<72x8x128xf32, #tpu.memory_space<vmem>>, vector<1x8x128xf32>,
    %c49 = arith.constant 49 : index
    %c0_150 = arith.constant 0 : index
    %c0_151 = arith.constant 0 : index
    %431 = vector.load %arg2[%c49, %c0_150, %c0_151] : memref<72x8x128xf32, #tpu.memory_space<vmem>>, vector<1x8x128xf32>
    %432 = vector.shape_cast %431 : vector<1x8x128xf32> to vector<8x128xf32>
    %433 = vector.shape_cast %398 : vector<8x128xf32> to vector<1x8x128xf32>
    tpu.vector_store %arg2[%c49, %c0_150, %c0_151], %433 {strides = array<i32>} : memref<72x8x128xf32, #tpu.memory_space<vmem>>, vector<1x8x128xf32>,
    %c50 = arith.constant 50 : index
    %c0_152 = arith.constant 0 : index
    %c0_153 = arith.constant 0 : index
    %434 = vector.load %arg2[%c50, %c0_152, %c0_153] : memref<72x8x128xf32, #tpu.memory_space<vmem>>, vector<1x8x128xf32>
    %435 = vector.shape_cast %434 : vector<1x8x128xf32> to vector<8x128xf32>
    %436 = vector.shape_cast %403 : vector<8x128xf32> to vector<1x8x128xf32>
    tpu.vector_store %arg2[%c50, %c0_152, %c0_153], %436 {strides = array<i32>} : memref<72x8x128xf32, #tpu.memory_space<vmem>>, vector<1x8x128xf32>,
    %c51 = arith.constant 51 : index
    %c0_154 = arith.constant 0 : index
    %c0_155 = arith.constant 0 : index
    %437 = vector.load %arg2[%c51, %c0_154, %c0_155] : memref<72x8x128xf32, #tpu.memory_space<vmem>>, vector<1x8x128xf32>
    %438 = vector.shape_cast %437 : vector<1x8x128xf32> to vector<8x128xf32>
    %439 = vector.shape_cast %408 : vector<8x128xf32> to vector<1x8x128xf32>
    tpu.vector_store %arg2[%c51, %c0_154, %c0_155], %439 {strides = array<i32>} : memref<72x8x128xf32, #tpu.memory_space<vmem>>, vector<1x8x128xf32>,
    %c52 = arith.constant 52 : index
    %c0_156 = arith.constant 0 : index
    %c0_157 = arith.constant 0 : index
    %440 = vector.load %arg2[%c52, %c0_156, %c0_157] : memref<72x8x128xf32, #tpu.memory_space<vmem>>, vector<1x8x128xf32>
    %441 = vector.shape_cast %440 : vector<1x8x128xf32> to vector<8x128xf32>
    %442 = vector.shape_cast %413 : vector<8x128xf32> to vector<1x8x128xf32>
    tpu.vector_store %arg2[%c52, %c0_156, %c0_157], %442 {strides = array<i32>} : memref<72x8x128xf32, #tpu.memory_space<vmem>>, vector<1x8x128xf32>,
    %c53 = arith.constant 53 : index
    %c0_158 = arith.constant 0 : index
    %c0_159 = arith.constant 0 : index
    %443 = vector.load %arg2[%c53, %c0_158, %c0_159] : memref<72x8x128xf32, #tpu.memory_space<vmem>>, vector<1x8x128xf32>
    %444 = vector.shape_cast %443 : vector<1x8x128xf32> to vector<8x128xf32>
    %445 = vector.shape_cast %418 : vector<8x128xf32> to vector<1x8x128xf32>
    tpu.vector_store %arg2[%c53, %c0_158, %c0_159], %445 {strides = array<i32>} : memref<72x8x128xf32, #tpu.memory_space<vmem>>, vector<1x8x128xf32>,
    %446 = arith.mulf %19, %130 : vector<8x128xf32>
    %447 = arith.mulf %25, %139 : vector<8x128xf32>
    %448 = arith.addf %446, %447 : vector<8x128xf32>
    %449 = arith.mulf %19, %133 : vector<8x128xf32>
    %450 = arith.mulf %25, %142 : vector<8x128xf32>
    %451 = arith.addf %449, %450 : vector<8x128xf32>
    %452 = arith.mulf %19, %136 : vector<8x128xf32>
    %453 = arith.mulf %25, %145 : vector<8x128xf32>
    %454 = arith.addf %452, %453 : vector<8x128xf32>
    %455 = arith.mulf %21, %130 : vector<8x128xf32>
    %456 = arith.mulf %27, %139 : vector<8x128xf32>
    %457 = arith.addf %455, %456 : vector<8x128xf32>
    %458 = arith.mulf %21, %133 : vector<8x128xf32>
    %459 = arith.mulf %27, %142 : vector<8x128xf32>
    %460 = arith.addf %458, %459 : vector<8x128xf32>
    %461 = arith.mulf %21, %136 : vector<8x128xf32>
    %462 = arith.mulf %27, %145 : vector<8x128xf32>
    %463 = arith.addf %461, %462 : vector<8x128xf32>
    %464 = arith.mulf %23, %130 : vector<8x128xf32>
    %465 = arith.mulf %29, %139 : vector<8x128xf32>
    %466 = arith.addf %464, %465 : vector<8x128xf32>
    %467 = arith.mulf %23, %133 : vector<8x128xf32>
    %468 = arith.mulf %29, %142 : vector<8x128xf32>
    %469 = arith.addf %467, %468 : vector<8x128xf32>
    %470 = arith.mulf %23, %136 : vector<8x128xf32>
    %471 = arith.mulf %29, %145 : vector<8x128xf32>
    %472 = arith.addf %470, %471 : vector<8x128xf32>
    %c54 = arith.constant 54 : index
    %c0_160 = arith.constant 0 : index
    %c0_161 = arith.constant 0 : index
    %473 = vector.load %arg2[%c54, %c0_160, %c0_161] : memref<72x8x128xf32, #tpu.memory_space<vmem>>, vector<1x8x128xf32>
    %474 = vector.shape_cast %473 : vector<1x8x128xf32> to vector<8x128xf32>
    %475 = vector.shape_cast %448 : vector<8x128xf32> to vector<1x8x128xf32>
    tpu.vector_store %arg2[%c54, %c0_160, %c0_161], %475 {strides = array<i32>} : memref<72x8x128xf32, #tpu.memory_space<vmem>>, vector<1x8x128xf32>,
    %c55 = arith.constant 55 : index
    %c0_162 = arith.constant 0 : index
    %c0_163 = arith.constant 0 : index
    %476 = vector.load %arg2[%c55, %c0_162, %c0_163] : memref<72x8x128xf32, #tpu.memory_space<vmem>>, vector<1x8x128xf32>
    %477 = vector.shape_cast %476 : vector<1x8x128xf32> to vector<8x128xf32>
    %478 = vector.shape_cast %451 : vector<8x128xf32> to vector<1x8x128xf32>
    tpu.vector_store %arg2[%c55, %c0_162, %c0_163], %478 {strides = array<i32>} : memref<72x8x128xf32, #tpu.memory_space<vmem>>, vector<1x8x128xf32>,
    %c56 = arith.constant 56 : index
    %c0_164 = arith.constant 0 : index
    %c0_165 = arith.constant 0 : index
    %479 = vector.load %arg2[%c56, %c0_164, %c0_165] : memref<72x8x128xf32, #tpu.memory_space<vmem>>, vector<1x8x128xf32>
    %480 = vector.shape_cast %479 : vector<1x8x128xf32> to vector<8x128xf32>
    %481 = vector.shape_cast %454 : vector<8x128xf32> to vector<1x8x128xf32>
    tpu.vector_store %arg2[%c56, %c0_164, %c0_165], %481 {strides = array<i32>} : memref<72x8x128xf32, #tpu.memory_space<vmem>>, vector<1x8x128xf32>,
    %c57 = arith.constant 57 : index
    %c0_166 = arith.constant 0 : index
    %c0_167 = arith.constant 0 : index
    %482 = vector.load %arg2[%c57, %c0_166, %c0_167] : memref<72x8x128xf32, #tpu.memory_space<vmem>>, vector<1x8x128xf32>
    %483 = vector.shape_cast %482 : vector<1x8x128xf32> to vector<8x128xf32>
    %484 = vector.shape_cast %457 : vector<8x128xf32> to vector<1x8x128xf32>
    tpu.vector_store %arg2[%c57, %c0_166, %c0_167], %484 {strides = array<i32>} : memref<72x8x128xf32, #tpu.memory_space<vmem>>, vector<1x8x128xf32>,
    %c58 = arith.constant 58 : index
    %c0_168 = arith.constant 0 : index
    %c0_169 = arith.constant 0 : index
    %485 = vector.load %arg2[%c58, %c0_168, %c0_169] : memref<72x8x128xf32, #tpu.memory_space<vmem>>, vector<1x8x128xf32>
    %486 = vector.shape_cast %485 : vector<1x8x128xf32> to vector<8x128xf32>
    %487 = vector.shape_cast %460 : vector<8x128xf32> to vector<1x8x128xf32>
    tpu.vector_store %arg2[%c58, %c0_168, %c0_169], %487 {strides = array<i32>} : memref<72x8x128xf32, #tpu.memory_space<vmem>>, vector<1x8x128xf32>,
    %c59 = arith.constant 59 : index
    %c0_170 = arith.constant 0 : index
    %c0_171 = arith.constant 0 : index
    %488 = vector.load %arg2[%c59, %c0_170, %c0_171] : memref<72x8x128xf32, #tpu.memory_space<vmem>>, vector<1x8x128xf32>
    %489 = vector.shape_cast %488 : vector<1x8x128xf32> to vector<8x128xf32>
    %490 = vector.shape_cast %463 : vector<8x128xf32> to vector<1x8x128xf32>
    tpu.vector_store %arg2[%c59, %c0_170, %c0_171], %490 {strides = array<i32>} : memref<72x8x128xf32, #tpu.memory_space<vmem>>, vector<1x8x128xf32>,
    %c60 = arith.constant 60 : index
    %c0_172 = arith.constant 0 : index
    %c0_173 = arith.constant 0 : index
    %491 = vector.load %arg2[%c60, %c0_172, %c0_173] : memref<72x8x128xf32, #tpu.memory_space<vmem>>, vector<1x8x128xf32>
    %492 = vector.shape_cast %491 : vector<1x8x128xf32> to vector<8x128xf32>
    %493 = vector.shape_cast %466 : vector<8x128xf32> to vector<1x8x128xf32>
    tpu.vector_store %arg2[%c60, %c0_172, %c0_173], %493 {strides = array<i32>} : memref<72x8x128xf32, #tpu.memory_space<vmem>>, vector<1x8x128xf32>,
    %c61 = arith.constant 61 : index
    %c0_174 = arith.constant 0 : index
    %c0_175 = arith.constant 0 : index
    %494 = vector.load %arg2[%c61, %c0_174, %c0_175] : memref<72x8x128xf32, #tpu.memory_space<vmem>>, vector<1x8x128xf32>
    %495 = vector.shape_cast %494 : vector<1x8x128xf32> to vector<8x128xf32>
    %496 = vector.shape_cast %469 : vector<8x128xf32> to vector<1x8x128xf32>
    tpu.vector_store %arg2[%c61, %c0_174, %c0_175], %496 {strides = array<i32>} : memref<72x8x128xf32, #tpu.memory_space<vmem>>, vector<1x8x128xf32>,
    %c62 = arith.constant 62 : index
    %c0_176 = arith.constant 0 : index
    %c0_177 = arith.constant 0 : index
    %497 = vector.load %arg2[%c62, %c0_176, %c0_177] : memref<72x8x128xf32, #tpu.memory_space<vmem>>, vector<1x8x128xf32>
    %498 = vector.shape_cast %497 : vector<1x8x128xf32> to vector<8x128xf32>
    %499 = vector.shape_cast %472 : vector<8x128xf32> to vector<1x8x128xf32>
    tpu.vector_store %arg2[%c62, %c0_176, %c0_177], %499 {strides = array<i32>} : memref<72x8x128xf32, #tpu.memory_space<vmem>>, vector<1x8x128xf32>,
    %500 = arith.mulf %123, %146 : vector<8x128xf32>
    %501 = arith.mulf %127, %150 : vector<8x128xf32>
    %502 = arith.addf %500, %501 : vector<8x128xf32>
    %503 = arith.mulf %124, %147 : vector<8x128xf32>
    %504 = arith.addf %502, %503 : vector<8x128xf32>
    %505 = arith.mulf %123, %151 : vector<8x128xf32>
    %506 = arith.mulf %127, %155 : vector<8x128xf32>
    %507 = arith.addf %505, %506 : vector<8x128xf32>
    %508 = arith.mulf %124, %152 : vector<8x128xf32>
    %509 = arith.addf %507, %508 : vector<8x128xf32>
    %510 = arith.mulf %123, %156 : vector<8x128xf32>
    %511 = arith.mulf %127, %160 : vector<8x128xf32>
    %512 = arith.addf %510, %511 : vector<8x128xf32>
    %513 = arith.mulf %124, %157 : vector<8x128xf32>
    %514 = arith.addf %512, %513 : vector<8x128xf32>
    %515 = arith.mulf %123, %151 : vector<8x128xf32>
    %516 = arith.mulf %127, %155 : vector<8x128xf32>
    %517 = arith.addf %515, %516 : vector<8x128xf32>
    %518 = arith.mulf %124, %152 : vector<8x128xf32>
    %519 = arith.addf %517, %518 : vector<8x128xf32>
    %520 = arith.mulf %123, %161 : vector<8x128xf32>
    %521 = arith.mulf %127, %165 : vector<8x128xf32>
    %522 = arith.addf %520, %521 : vector<8x128xf32>
    %523 = arith.mulf %124, %162 : vector<8x128xf32>
    %524 = arith.addf %522, %523 : vector<8x128xf32>
    %525 = arith.mulf %123, %166 : vector<8x128xf32>
    %526 = arith.mulf %127, %170 : vector<8x128xf32>
    %527 = arith.addf %525, %526 : vector<8x128xf32>
    %528 = arith.mulf %124, %167 : vector<8x128xf32>
    %529 = arith.addf %527, %528 : vector<8x128xf32>
    %530 = arith.mulf %123, %156 : vector<8x128xf32>
    %531 = arith.mulf %127, %160 : vector<8x128xf32>
    %532 = arith.addf %530, %531 : vector<8x128xf32>
    %533 = arith.mulf %124, %157 : vector<8x128xf32>
    %534 = arith.addf %532, %533 : vector<8x128xf32>
    %535 = arith.mulf %123, %166 : vector<8x128xf32>
    %536 = arith.mulf %127, %170 : vector<8x128xf32>
    %537 = arith.addf %535, %536 : vector<8x128xf32>
    %538 = arith.mulf %124, %167 : vector<8x128xf32>
    %539 = arith.addf %537, %538 : vector<8x128xf32>
    %540 = arith.mulf %123, %171 : vector<8x128xf32>
    %541 = arith.mulf %127, %175 : vector<8x128xf32>
    %542 = arith.addf %540, %541 : vector<8x128xf32>
    %543 = arith.mulf %124, %172 : vector<8x128xf32>
    %544 = arith.addf %542, %543 : vector<8x128xf32>
    %c63 = arith.constant 63 : index
    %c0_178 = arith.constant 0 : index
    %c0_179 = arith.constant 0 : index
    %545 = vector.load %arg2[%c63, %c0_178, %c0_179] : memref<72x8x128xf32, #tpu.memory_space<vmem>>, vector<1x8x128xf32>
    %546 = vector.shape_cast %545 : vector<1x8x128xf32> to vector<8x128xf32>
    %547 = vector.shape_cast %504 : vector<8x128xf32> to vector<1x8x128xf32>
    tpu.vector_store %arg2[%c63, %c0_178, %c0_179], %547 {strides = array<i32>} : memref<72x8x128xf32, #tpu.memory_space<vmem>>, vector<1x8x128xf32>,
    %c64 = arith.constant 64 : index
    %c0_180 = arith.constant 0 : index
    %c0_181 = arith.constant 0 : index
    %548 = vector.load %arg2[%c64, %c0_180, %c0_181] : memref<72x8x128xf32, #tpu.memory_space<vmem>>, vector<1x8x128xf32>
    %549 = vector.shape_cast %548 : vector<1x8x128xf32> to vector<8x128xf32>
    %550 = vector.shape_cast %509 : vector<8x128xf32> to vector<1x8x128xf32>
    tpu.vector_store %arg2[%c64, %c0_180, %c0_181], %550 {strides = array<i32>} : memref<72x8x128xf32, #tpu.memory_space<vmem>>, vector<1x8x128xf32>,
    %c65 = arith.constant 65 : index
    %c0_182 = arith.constant 0 : index
    %c0_183 = arith.constant 0 : index
    %551 = vector.load %arg2[%c65, %c0_182, %c0_183] : memref<72x8x128xf32, #tpu.memory_space<vmem>>, vector<1x8x128xf32>
    %552 = vector.shape_cast %551 : vector<1x8x128xf32> to vector<8x128xf32>
    %553 = vector.shape_cast %514 : vector<8x128xf32> to vector<1x8x128xf32>
    tpu.vector_store %arg2[%c65, %c0_182, %c0_183], %553 {strides = array<i32>} : memref<72x8x128xf32, #tpu.memory_space<vmem>>, vector<1x8x128xf32>,
    %c66 = arith.constant 66 : index
    %c0_184 = arith.constant 0 : index
    %c0_185 = arith.constant 0 : index
    %554 = vector.load %arg2[%c66, %c0_184, %c0_185] : memref<72x8x128xf32, #tpu.memory_space<vmem>>, vector<1x8x128xf32>
    %555 = vector.shape_cast %554 : vector<1x8x128xf32> to vector<8x128xf32>
    %556 = vector.shape_cast %519 : vector<8x128xf32> to vector<1x8x128xf32>
    tpu.vector_store %arg2[%c66, %c0_184, %c0_185], %556 {strides = array<i32>} : memref<72x8x128xf32, #tpu.memory_space<vmem>>, vector<1x8x128xf32>,
    %c67 = arith.constant 67 : index
    %c0_186 = arith.constant 0 : index
    %c0_187 = arith.constant 0 : index
    %557 = vector.load %arg2[%c67, %c0_186, %c0_187] : memref<72x8x128xf32, #tpu.memory_space<vmem>>, vector<1x8x128xf32>
    %558 = vector.shape_cast %557 : vector<1x8x128xf32> to vector<8x128xf32>
    %559 = vector.shape_cast %524 : vector<8x128xf32> to vector<1x8x128xf32>
    tpu.vector_store %arg2[%c67, %c0_186, %c0_187], %559 {strides = array<i32>} : memref<72x8x128xf32, #tpu.memory_space<vmem>>, vector<1x8x128xf32>,
    %c68 = arith.constant 68 : index
    %c0_188 = arith.constant 0 : index
    %c0_189 = arith.constant 0 : index
    %560 = vector.load %arg2[%c68, %c0_188, %c0_189] : memref<72x8x128xf32, #tpu.memory_space<vmem>>, vector<1x8x128xf32>
    %561 = vector.shape_cast %560 : vector<1x8x128xf32> to vector<8x128xf32>
    %562 = vector.shape_cast %529 : vector<8x128xf32> to vector<1x8x128xf32>
    tpu.vector_store %arg2[%c68, %c0_188, %c0_189], %562 {strides = array<i32>} : memref<72x8x128xf32, #tpu.memory_space<vmem>>, vector<1x8x128xf32>,
    %c69 = arith.constant 69 : index
    %c0_190 = arith.constant 0 : index
    %c0_191 = arith.constant 0 : index
    %563 = vector.load %arg2[%c69, %c0_190, %c0_191] : memref<72x8x128xf32, #tpu.memory_space<vmem>>, vector<1x8x128xf32>
    %564 = vector.shape_cast %563 : vector<1x8x128xf32> to vector<8x128xf32>
    %565 = vector.shape_cast %534 : vector<8x128xf32> to vector<1x8x128xf32>
    tpu.vector_store %arg2[%c69, %c0_190, %c0_191], %565 {strides = array<i32>} : memref<72x8x128xf32, #tpu.memory_space<vmem>>, vector<1x8x128xf32>,
    %c70 = arith.constant 70 : index
    %c0_192 = arith.constant 0 : index
    %c0_193 = arith.constant 0 : index
    %566 = vector.load %arg2[%c70, %c0_192, %c0_193] : memref<72x8x128xf32, #tpu.memory_space<vmem>>, vector<1x8x128xf32>
    %567 = vector.shape_cast %566 : vector<1x8x128xf32> to vector<8x128xf32>
    %568 = vector.shape_cast %539 : vector<8x128xf32> to vector<1x8x128xf32>
    tpu.vector_store %arg2[%c70, %c0_192, %c0_193], %568 {strides = array<i32>} : memref<72x8x128xf32, #tpu.memory_space<vmem>>, vector<1x8x128xf32>,
    %c71 = arith.constant 71 : index
    %c0_194 = arith.constant 0 : index
    %c0_195 = arith.constant 0 : index
    %569 = vector.load %arg2[%c71, %c0_194, %c0_195] : memref<72x8x128xf32, #tpu.memory_space<vmem>>, vector<1x8x128xf32>
    %570 = vector.shape_cast %569 : vector<1x8x128xf32> to vector<8x128xf32>
    %571 = vector.shape_cast %544 : vector<8x128xf32> to vector<1x8x128xf32>
    tpu.vector_store %arg2[%c71, %c0_194, %c0_195], %571 {strides = array<i32>} : memref<72x8x128xf32, #tpu.memory_space<vmem>>, vector<1x8x128xf32>,
    return
  }
  func.func @transform_0(%arg0: i32) -> (i32, i32, i32) {
    %c0_i32 = arith.constant 0 : i32
    %c0_i32_0 = arith.constant 0 : i32
    %c0_i32_1 = arith.constant 0 : i32
    return %c0_i32, %arg0, %c0_i32_0 : i32, i32, i32
  }
  func.func @transform_1(%arg0: i32) -> (i32, i32, i32) {
    %c0_i32 = arith.constant 0 : i32
    %c0_i32_0 = arith.constant 0 : i32
    %c0_i32_1 = arith.constant 0 : i32
    return %c0_i32, %arg0, %c0_i32_0 : i32, i32, i32
  }
}

</mosaic_0001>

<bundles_post_ra>
// kernel: _vfgrad_impl.1
= control target key start
LH: loop header
LB: loop body
LE: loop exit
PB: predicated region body
PF: predicated region fallthrough
CT: control target
= control target key end

     0   :  { %s1234_s0 = inlined_call_operand.vmem [shape: f32[15,8,128], index: 0, kind: input, shape index: {}]   ;;  %s1235_s1 = inlined_call_operand.vmem [shape: f32[72,8,128], index: 1, kind: output, shape index: {}]  }
   0x1   :  { %v8_v0 = vld [vmem:[%s1234_s0] sm:$0xff]  ;;  %v457_v1 = vld [vmem:[%s1234_s0 + $0x8] sm:$0xff]  ;;  %v458_v2 = vld [vmem:[%s1234_s0 + $0x10] sm:$0xff] }
   0x2   :  { %v459_v3 = vld [vmem:[%s1234_s0 + $0x18] sm:$0xff]  ;;  %v460_v4 = vld [vmem:[%s1234_s0 + $0x20] sm:$0xff]  ;;  %v461_v5 = vld [vmem:[%s1234_s0 + $0x28] sm:$0xff] }
   0x3   :  { %v462_v6 = vld [vmem:[%s1234_s0 + $0x30] sm:$0xff]  ;;  %v463_v7 = vld [vmem:[%s1234_s0 + $0x38] sm:$0xff]  ;;  %v464_v8 = vld [vmem:[%s1234_s0 + $0x40] sm:$0xff] }
   0x4   :  { %v590_v9 = vld [vmem:[%s1234_s0 + $0x48] sm:$0xff]  ;;  %v595_v10 = vld [vmem:[%s1234_s0 + $0x50] sm:$0xff]  ;;  %v600_v11 = vld [vmem:[%s1234_s0 + $0x58] sm:$0xff] }
   0x5   :  { %v37_v12 = vmul.f32 %v590_v9, %v8_v0  ;;  %v38_v13 = vmul.f32 %v595_v10, %v459_v3  ;;  %v40_v14 = vmul.f32 %v600_v11, %v462_v6  ;;  %v42_v15 = vmul.f32 %v590_v9, %v457_v1  ;;  %v609_v16 = vld [vmem:[%s1234_s0 + $0x60] sm:$0xff]  ;;  %v614_v17 = vld [vmem:[%s1234_s0 + $0x68] sm:$0xff]  ;;  %v619_v18 = vld [vmem:[%s1234_s0 + $0x70] sm:$0xff] }
   0x6   :  { %v43_v19 = vmul.f32 %v595_v10, %v460_v4  ;;  %v45_v20 = vmul.f32 %v600_v11, %v463_v7  ;;  %v47_v21 = vmul.f32 %v590_v9, %v458_v2  ;;  %v48_v22 = vmul.f32 %v595_v10, %v461_v5 }
   0x7   :  { %v39_v23 = vadd.f32 %v38_v13, %v37_v12  ;;  %v50_v24 = vmul.f32 %v600_v11, %v464_v8  ;;  %v52_v25 = vmul.f32 %v609_v16, %v8_v0  ;;  %v53_v26 = vmul.f32 %v614_v17, %v459_v3 }
   0x8   :  { %v44_v27 = vadd.f32 %v43_v19, %v42_v15  ;;  %v49_v28 = vadd.f32 %v48_v22, %v47_v21  ;;  %v55_v29 = vmul.f32 %v619_v18, %v462_v6  ;;  %v57_v30 = vmul.f32 %v609_v16, %v457_v1 }
   0x9   :  { %v630_v31 = vadd.f32 %v40_v14, %v39_v23  ;;  %v54_v32 = vadd.f32 %v53_v26, %v52_v25  ;;  %v58_v33 = vmul.f32 %v614_v17, %v460_v4  ;;  %v60_v34 = vmul.f32 %v619_v18, %v463_v7 }
   0xa   :  { %v634_v35 = vadd.f32 %v45_v20, %v44_v27  ;;  %v636_v36 = vadd.f32 %v50_v24, %v49_v28  ;;  %v62_v37 = vmul.f32 %v609_v16, %v458_v2  ;;  %v63_v38 = vmul.f32 %v614_v17, %v461_v5 }
   0xb   :  { %v642_v39 = vmul.f32 %v630_v31, %v630_v31  ;;  %v644_v40 = vadd.f32 %v55_v29, %v54_v32  ;;  %v59_v41 = vadd.f32 %v58_v33, %v57_v30  ;;  %v65_v42 = vmul.f32 %v619_v18, %v464_v8 }
   0xc   :  { %v649_v43 = vmul.f32 %v634_v35, %v634_v35  ;;  %v653_v44 = vmul.f32 %v636_v36, %v636_v36  ;;  %v64_v46 = vadd.f32 %v63_v38, %v62_v37  ;;  %v706_v0 = vmul.f32 %v634_v35, %v630_v31 }
   0xd   :  { %v655_v45 = vadd.f32 %v60_v34, %v59_v41  ;;  %v659_v47 = vmul.f32 %v644_v40, %v644_v40  ;;  %v665_v49 = vmul.f32 %v644_v40, %v630_v31  ;;  %v710_v1 = vmul.f32 %v636_v36, %v630_v31 }
   0xe   :  { %v69_v48 = vadd.f32 %v649_v43, %v642_v39  ;;  %v667_v50 = vadd.f32 %v65_v42, %v64_v46  ;;  %v714_v2 = vmul.f32 %v636_v36, %v634_v35  ;;  %v718_v3 = vmul.f32 %v644_v40, %v634_v35 }
   0xf   :  { %v671_v51 = vmul.f32 %v655_v45, %v655_v45  ;;  %v675_v52 = vmul.f32 %v655_v45, %v634_v35  ;;  %v722_v4 = vmul.f32 %v655_v45, %v644_v40  ;;  %v726_v5 = vmul.f32 %v655_v45, %v630_v31 }
  0x10   :  { %v678_v53 = vadd.f32 %v653_v44, %v69_v48  ;;  %v684_v55 = vmul.f32 %v667_v50, %v667_v50  ;;  %v691_v57 = vmul.f32 %v667_v50, %v636_v36  ;;  %v730_v6 = vmul.f32 %v644_v40, %v636_v36 }
  0x11   :  { %v74_v54 = vadd.f32 %v671_v51, %v659_v47  ;;  %v79_v56 = vadd.f32 %v675_v52, %v665_v49  ;;  %v734_v7 = vmul.f32 %v655_v45, %v636_v36  ;;  %v740_v12 = vmul.f32 %v667_v50, %v644_v40 }
  0x12   :  { %542 = vrsqrt.f32 %v678_v53  ;;  %v744_v13 = vmul.f32 %v667_v50, %v655_v45  ;;  %v748_v14 = vmul.f32 %v667_v50, %v630_v31  ;;  %v752_v15 = vmul.f32 %v667_v50, %v634_v35 }
  0x13   :  { %v694_v58 = vadd.f32 %v684_v55, %v74_v54  ;;  %v697_v59 = vadd.f32 %v691_v57, %v79_v56 }
  0x15   :  { %v92_v60 = vmul.f32 %v694_v58, %v678_v53  ;;  %544 = vrsqrt.f32 %v694_v58  ;;  %v93_v61 = vmul.f32 %v697_v59, %v697_v59 }
  0x17   :  { %v94_v62 = vsub.f32 %v92_v60, %v93_v61 }
  0x19   :  { %v95_v63 = vmax.f32 %v94_v62, 1e-12 }
  0x1b   :  { %546 = vrsqrt.f32 %v95_v63 }
  0x1f   :  { %v736_v8 = vpop.eup %542 }
  0x20   :  { %v97_v19 = vmul.f32 %v736_v8, %v630_v31  ;;  %v98_v20 = vmul.f32 %v736_v8, %v634_v35  ;;  %v99_v21 = vmul.f32 %v736_v8, %v636_v36  ;;  %v192_v22 = vmul.f32 %v736_v8, %v642_v39 }
  0x21   :  { %v193_v23 = vmul.f32 %v736_v8, %v706_v0  ;;  %v194_v24 = vmul.f32 %v736_v8, %v710_v1  ;;  %v195_v25 = vmul.f32 %v736_v8, %v649_v43  ;;  %v196_v26 = vmul.f32 %v736_v8, %v714_v2 }
  0x22   :  { %v166_v27 = vmul.f32 %v590_v9, %v97_v19  ;;  %v167_v28 = vmul.f32 %v590_v9, %v98_v20  ;;  %v168_v29 = vmul.f32 %v590_v9, %v99_v21  ;;  %v169_v30 = vmul.f32 %v595_v10, %v97_v19  ;;  %479 = vst [vmem:[%s1235_s1 + $0x48] sm:$0xff] %v192_v22  ;;  %v777_v32 = vpop.eup %544 }
  0x23   :  { %v170_v33 = vmul.f32 %v595_v10, %v98_v20  ;;  %v171_v34 = vmul.f32 %v595_v10, %v99_v21  ;;  %v172_v37 = vmul.f32 %v600_v11, %v97_v19  ;;  %v173_v38 = vmul.f32 %v600_v11, %v98_v20  ;;  %480 = vst [vmem:[%s1235_s1 + $0x50] sm:$0xff] %v193_v23 }
  0x24   :  { %482 = vst [vmem:[%s1235_s1 + $0x60] sm:$0xff] %v193_v23  ;;  %481 = vst [vmem:[%s1235_s1 + $0x58] sm:$0xff] %v194_v24  ;;  %v174_v41 = vmul.f32 %v600_v11, %v99_v21  ;;  %v197_v42 = vmul.f32 %v736_v8, %v653_v44  ;;  %v100_v46 = vmul.f32 %v777_v32, %v644_v40 }
  0x25   :  { %485 = vst [vmem:[%s1235_s1 + $0x78] sm:$0xff] %v194_v24  ;;  %483 = vst [vmem:[%s1235_s1 + $0x68] sm:$0xff] %v195_v25  ;;  %v101_v48 = vmul.f32 %v777_v32, %v655_v45  ;;  %v102_v54 = vmul.f32 %v777_v32, %v667_v50  ;;  %v243_v56 = vmul.f32 %v777_v32, %v659_v47 }
  0x26   :  { %484 = vst [vmem:[%s1235_s1 + $0x70] sm:$0xff] %v196_v26  ;;  %486 = vst [vmem:[%s1235_s1 + $0x80] sm:$0xff] %v196_v26  ;;  %v244_v60 = vmul.f32 %v777_v32, %v722_v4  ;;  %v245_v61 = vmul.f32 %v777_v32, %v740_v12  ;;  %v216_v62 = vmul.f32 %v609_v16, %v100_v46 }
  0x27   :  { %175 = vst [vmem:[%s1235_s1] sm:$0xff] %v166_v27  ;;  %471 = vst [vmem:[%s1235_s1 + $0x8] sm:$0xff] %v167_v28  ;;  %v217_v63 = vmul.f32 %v609_v16, %v101_v48  ;;  %v219_v19 = vmul.f32 %v614_v17, %v100_v46  ;;  %v220_v20 = vmul.f32 %v614_v17, %v101_v48 }
  0x28   :  { %472 = vst [vmem:[%s1235_s1 + $0x10] sm:$0xff] %v168_v29  ;;  %473 = vst [vmem:[%s1235_s1 + $0x18] sm:$0xff] %v169_v30  ;;  %v218_v21 = vmul.f32 %v609_v16, %v102_v54  ;;  %v221_v22 = vmul.f32 %v614_v17, %v102_v54  ;;  %v222_v23 = vmul.f32 %v619_v18, %v100_v46  ;;  %v547_v29 = vpop.eup %546 }
  0x29   :  { %474 = vst [vmem:[%s1235_s1 + $0x20] sm:$0xff] %v170_v33  ;;  %475 = vst [vmem:[%s1235_s1 + $0x28] sm:$0xff] %v171_v34  ;;  %v223_v24 = vmul.f32 %v619_v18, %v101_v48  ;;  %v224_v25 = vmul.f32 %v619_v18, %v102_v54  ;;  %v246_v26 = vmul.f32 %v777_v32, %v671_v51  ;;  %v908_v33 = vmul.f32 2.0, %v665_v49 }
  0x2a   :  { %476 = vst [vmem:[%s1235_s1 + $0x30] sm:$0xff] %v172_v37  ;;  %477 = vst [vmem:[%s1235_s1 + $0x38] sm:$0xff] %v173_v38  ;;  %v247_v27 = vmul.f32 %v777_v32, %v744_v13  ;;  %v248_v28 = vmul.f32 %v777_v32, %v684_v55  ;;  %v905_v30 = vmul.f32 %v777_v32, %v736_v8  ;;  %v128_v49 = vsub.f32 0.0, %v547_v29 }
  0x2b   :  { %478 = vst [vmem:[%s1235_s1 + $0x40] sm:$0xff] %v174_v41  ;;  %487 = vst [vmem:[%s1235_s1 + $0x88] sm:$0xff] %v197_v42  ;;  %v912_v34 = vadd.f32 %v718_v3, %v726_v5  ;;  %v930_v3 = vmul.f32 2.0, %v675_v52  ;;  %v933_v5 = vmul.f32 %v547_v29, %v694_v58  ;;  %v936_v37 = vmul.f32 %v547_v29, %v678_v53 }
  0x2c   :  { %497 = vst [vmem:[%s1235_s1 + $0xd8] sm:$0xff] %v243_v56  ;;  %498 = vst [vmem:[%s1235_s1 + $0xe0] sm:$0xff] %v244_v60  ;;  %v940_v38 = vmul.f32 %v905_v30, %v697_v59  ;;  %v944_v41 = vadd.f32 %v730_v6, %v748_v14  ;;  %v948_v42 = vadd.f32 %v734_v7, %v752_v15  ;;  %v951_v52 = vmul.f32 2.0, %v691_v57 }
  0x2d   :  { %500 = vst [vmem:[%s1235_s1 + $0xf0] sm:$0xff] %v244_v60  ;;  %499 = vst [vmem:[%s1235_s1 + $0xe8] sm:$0xff] %v245_v61  ;;  %v954_v58 = vmul.f32 %v128_v49, %v697_v59  ;;  %v130_v53 = vmul.f32 %v933_v5, %v630_v31  ;;  %v140_v46 = vmul.f32 %v936_v37, %v644_v40 }
  0x2e   :  { %503 = vst [vmem:[%s1235_s1 + $0x108] sm:$0xff] %v245_v61  ;;  %488 = vst [vmem:[%s1235_s1 + $0x90] sm:$0xff] %v216_v62  ;;  %v133_v6 = vmul.f32 %v933_v5, %v634_v35  ;;  %v88_v14 = vmul.f32 %v940_v38, %v940_v38  ;;  %v143_v7 = vmul.f32 %v936_v37, %v655_v45 }
  0x2f   :  { %489 = vst [vmem:[%s1235_s1 + $0x98] sm:$0xff] %v217_v63  ;;  %491 = vst [vmem:[%s1235_s1 + $0xa8] sm:$0xff] %v219_v19  ;;  %v136_v57 = vmul.f32 %v933_v5, %v636_v36  ;;  %v146_v59 = vmul.f32 %v936_v37, %v667_v50  ;;  %v131_v15 = vmul.f32 %v954_v58, %v644_v40 }
  0x30   :  { %492 = vst [vmem:[%s1235_s1 + $0xb0] sm:$0xff] %v220_v20  ;;  %490 = vst [vmem:[%s1235_s1 + $0xa0] sm:$0xff] %v218_v21  ;;  %v139_v48 = vmul.f32 %v954_v58, %v630_v31  ;;  %v134_v54 = vmul.f32 %v954_v58, %v655_v45  ;;  %v142_v56 = vmul.f32 %v954_v58, %v634_v35  ;;  %v89_v60 = vsub.f32 1.0, %v88_v14 }
  0x31   :  { %493 = vst [vmem:[%s1235_s1 + $0xb8] sm:$0xff] %v221_v22  ;;  %494 = vst [vmem:[%s1235_s1 + $0xc0] sm:$0xff] %v222_v23  ;;  %v137_v61 = vmul.f32 %v954_v58, %v667_v50  ;;  %v145_v62 = vmul.f32 %v954_v58, %v636_v36  ;;  %v405_v63 = vmul.f32 %v933_v5, %v642_v39 }
  0x32   :  { %495 = vst [vmem:[%s1235_s1 + $0xc8] sm:$0xff] %v223_v24  ;;  %496 = vst [vmem:[%s1235_s1 + $0xd0] sm:$0xff] %v224_v25  ;;  %v132_v19 = vadd.f32 %v131_v15, %v130_v53  ;;  %v141_v20 = vadd.f32 %v140_v46, %v139_v48  ;;  %v135_v21 = vadd.f32 %v134_v54, %v133_v6  ;;  %v90_v23 = vmax.f32 %v89_v60, 1e-12 }
  0x33   :  { %501 = vst [vmem:[%s1235_s1 + $0xf8] sm:$0xff] %v246_v26  ;;  %502 = vst [vmem:[%s1235_s1 + $0x100] sm:$0xff] %v247_v27  ;;  %v144_v22 = vadd.f32 %v143_v7, %v142_v56  ;;  %v138_v24 = vadd.f32 %v137_v61, %v136_v57  ;;  %v147_v25 = vadd.f32 %v146_v59, %v145_v62 }
  0x34   :  { %504 = vst [vmem:[%s1235_s1 + $0x110] sm:$0xff] %v247_v27  ;;  %505 = vst [vmem:[%s1235_s1 + $0x118] sm:$0xff] %v248_v28  ;;  %v406_v26 = vmul.f32 %v908_v33, %v954_v58  ;;  %v360_v27 = vmul.f32 %v590_v9, %v132_v19  ;;  %v361_v28 = vmul.f32 %v609_v16, %v141_v20  ;;  %548 = vrsqrt.f32 %v90_v23 }
  0x35   :  { %v363_v29 = vmul.f32 %v590_v9, %v135_v21  ;;  %v364_v49 = vmul.f32 %v609_v16, %v144_v22  ;;  %v366_v53 = vmul.f32 %v590_v9, %v138_v24  ;;  %v367_v46 = vmul.f32 %v609_v16, %v147_v25 }
  0x36   :  { %v369_v6 = vmul.f32 %v595_v10, %v132_v19  ;;  %v362_v14 = vadd.f32 %v361_v28, %v360_v27  ;;  %v370_v57 = vmul.f32 %v614_v17, %v141_v20  ;;  %v372_v59 = vmul.f32 %v595_v10, %v135_v21 }
  0x37   :  { %v365_v7 = vadd.f32 %v364_v49, %v363_v29  ;;  %v368_v15 = vadd.f32 %v367_v46, %v366_v53  ;;  %v373_v48 = vmul.f32 %v614_v17, %v144_v22  ;;  %v375_v54 = vmul.f32 %v595_v10, %v138_v24 }
  0x38   :  { %v376_v56 = vmul.f32 %v614_v17, %v147_v25  ;;  %524 = vst [vmem:[%s1235_s1 + $0x1b0] sm:$0xff] %v362_v14  ;;  %v371_v60 = vadd.f32 %v370_v57, %v369_v6  ;;  %v378_v61 = vmul.f32 %v600_v11, %v132_v19  ;;  %v379_v62 = vmul.f32 %v619_v18, %v141_v20 }
  0x39   :  { %525 = vst [vmem:[%s1235_s1 + $0x1b8] sm:$0xff] %v365_v7  ;;  %v381_v23 = vmul.f32 %v600_v11, %v135_v21  ;;  %526 = vst [vmem:[%s1235_s1 + $0x1c0] sm:$0xff] %v368_v15  ;;  %v374_v27 = vadd.f32 %v373_v48, %v372_v59  ;;  %v382_v29 = vmul.f32 %v619_v18, %v144_v22 }
  0x3a   :  { %v377_v28 = vadd.f32 %v376_v56, %v375_v54  ;;  %v384_v49 = vmul.f32 %v600_v11, %v138_v24  ;;  %527 = vst [vmem:[%s1235_s1 + $0x1c8] sm:$0xff] %v371_v60  ;;  %v380_v53 = vadd.f32 %v379_v62, %v378_v61  ;;  %v385_v19 = vmul.f32 %v619_v18, %v147_v25 }
  0x3b   :  { %v407_v20 = vadd.f32 %v406_v26, %v405_v63  ;;  %v408_v21 = vmul.f32 %v936_v37, %v659_v47  ;;  %528 = vst [vmem:[%s1235_s1 + $0x1d0] sm:$0xff] %v374_v27  ;;  %v383_v22 = vadd.f32 %v382_v29, %v381_v23  ;;  %v410_v24 = vmul.f32 %v706_v0, %v933_v5 }
  0x3c   :  { %529 = vst [vmem:[%s1235_s1 + $0x1d8] sm:$0xff] %v377_v28  ;;  %v411_v46 = vmul.f32 %v912_v34, %v954_v58  ;;  %v413_v63 = vmul.f32 %v722_v4, %v936_v37  ;;  %530 = vst [vmem:[%s1235_s1 + $0x1e0] sm:$0xff] %v380_v53  ;;  %v386_v25 = vadd.f32 %v385_v19, %v384_v49 }
  0x3d   :  { %v409_v26 = vadd.f32 %v408_v21, %v407_v20  ;;  %v415_v6 = vmul.f32 %v710_v1, %v933_v5  ;;  %v416_v14 = vmul.f32 %v944_v41, %v954_v58  ;;  %531 = vst [vmem:[%s1235_s1 + $0x1e8] sm:$0xff] %v383_v22  ;;  %v418_v57 = vmul.f32 %v740_v12, %v936_v37 }
  0x3e   :  { %v412_v7 = vadd.f32 %v411_v46, %v410_v24  ;;  %v420_v59 = vmul.f32 %v933_v5, %v649_v43  ;;  %v421_v15 = vmul.f32 %v930_v3, %v954_v58  ;;  %532 = vst [vmem:[%s1235_s1 + $0x1f0] sm:$0xff] %v386_v25  ;;  %v423_v54 = vmul.f32 %v936_v37, %v671_v51 }
  0x3f   :  { %533 = vst [vmem:[%s1235_s1 + $0x1f8] sm:$0xff] %v409_v26  ;;  %v417_v48 = vadd.f32 %v416_v14, %v415_v6  ;;  %v425_v56 = vmul.f32 %v714_v2, %v933_v5  ;;  %v426_v60 = vmul.f32 %v948_v42, %v954_v58  ;;  %v428_v23 = vmul.f32 %v744_v13, %v936_v37 }
  0x40   :  { %v414_v61 = vadd.f32 %v413_v63, %v412_v7  ;;  %v422_v62 = vadd.f32 %v421_v15, %v420_v59  ;;  %v430_v27 = vmul.f32 %v933_v5, %v653_v44  ;;  %v431_v49 = vmul.f32 %v951_v52, %v954_v58 }
  0x41   :  { %v419_v28 = vadd.f32 %v418_v57, %v417_v48  ;;  %v427_v29 = vadd.f32 %v426_v60, %v425_v56  ;;  %v433_v53 = vmul.f32 %v936_v37, %v684_v55  ;;  %v84_v19 = vmul.f32 %v736_v8, %v736_v8  ;;  %v549_v21 = vpop.eup %548 }
  0x42   :  { %v85_v20 = vmul.f32 %v777_v32, %v777_v32  ;;  %534 = vst [vmem:[%s1235_s1 + $0x200] sm:$0xff] %v414_v61  ;;  %536 = vst [vmem:[%s1235_s1 + $0x210] sm:$0xff] %v414_v61  ;;  %v424_v5 = vadd.f32 %v423_v54, %v422_v62  ;;  %v432_v32 = vadd.f32 %v431_v49, %v430_v27  ;;  %v103_v37 = vsub.f32 0.0, %v549_v21 }
  0x43   :  { %535 = vst [vmem:[%s1235_s1 + $0x208] sm:$0xff] %v419_v28  ;;  %539 = vst [vmem:[%s1235_s1 + $0x228] sm:$0xff] %v419_v28  ;;  %v429_v8 = vadd.f32 %v428_v23, %v427_v29  ;;  %v105_v58 = vmul.f32 %v549_v21, %v940_v38 }
  0x44   :  { %537 = vst [vmem:[%s1235_s1 + $0x218] sm:$0xff] %v424_v5  ;;  %v434_v22 = vadd.f32 %v433_v53, %v432_v32  ;;  %v1093_v24 = vmul.f32 %v103_v37, %v905_v30 }
  0x45   :  { %538 = vst [vmem:[%s1235_s1 + $0x220] sm:$0xff] %v429_v8  ;;  %540 = vst [vmem:[%s1235_s1 + $0x230] sm:$0xff] %v429_v8  ;;  %v1095_v46 = vmul.f32 %v105_v58, %v84_v19  ;;  %v1097_v63 = vmul.f32 %v105_v58, %v85_v20 }
  0x46   :  { %541 = vst [vmem:[%s1235_s1 + $0x238] sm:$0xff] %v434_v22  ;;  %v108_v38 = vmul.f32 %v1093_v24, %v644_v40  ;;  %v117_v26 = vmul.f32 %v1093_v24, %v630_v31  ;;  %v111_v6 = vmul.f32 %v1093_v24, %v655_v45  ;;  %v120_v7 = vmul.f32 %v1093_v24, %v634_v35 }
  0x47   :  { %v109_v25 = vmul.f32 %v1095_v46, %v630_v31  ;;  %v118_v30 = vmul.f32 %v1097_v63, %v644_v40  ;;  %v112_v14 = vmul.f32 %v1095_v46, %v634_v35  ;;  %v121_v57 = vmul.f32 %v1097_v63, %v655_v45 }
  0x48   :  { %v114_v31 = vmul.f32 %v1093_v24, %v667_v50  ;;  %v115_v40 = vmul.f32 %v1095_v46, %v636_v36  ;;  %v123_v56 = vmul.f32 %v1093_v24, %v636_v36  ;;  %v124_v60 = vmul.f32 %v1097_v63, %v667_v50 }
  0x49   :  { %v110_v59 = vadd.f32 %v109_v25, %v108_v38  ;;  %v119_v15 = vadd.f32 %v118_v30, %v117_v26  ;;  %v113_v48 = vadd.f32 %v112_v14, %v111_v6  ;;  %v122_v54 = vadd.f32 %v121_v57, %v120_v7 }
  0x4a   :  { %v116_v61 = vadd.f32 %v115_v40, %v114_v31  ;;  %v125_v28 = vadd.f32 %v124_v60, %v123_v56  ;;  %v312_v26 = vmul.f32 %v908_v33, %v1093_v24  ;;  %v313_v6 = vmul.f32 %v1095_v46, %v642_v39 }
  0x4b   :  { %v267_v35 = vmul.f32 %v590_v9, %v110_v59  ;;  %v268_v45 = vmul.f32 %v609_v16, %v119_v15  ;;  %v276_v62 = vmul.f32 %v595_v10, %v110_v59  ;;  %v270_v23 = vmul.f32 %v590_v9, %v113_v48 }
  0x4c   :  { %v271_v27 = vmul.f32 %v609_v16, %v122_v54  ;;  %v277_v29 = vmul.f32 %v614_v17, %v119_v15  ;;  %v273_v36 = vmul.f32 %v590_v9, %v116_v61  ;;  %v279_v53 = vmul.f32 %v595_v10, %v113_v48 }
  0x4d   :  { %v269_v49 = vadd.f32 %v268_v45, %v267_v35  ;;  %v280_v50 = vmul.f32 %v614_v17, %v122_v54  ;;  %v274_v20 = vmul.f32 %v609_v16, %v125_v28  ;;  %v282_v21 = vmul.f32 %v595_v10, %v116_v61 }
  0x4e   :  { %v272_v19 = vadd.f32 %v271_v27, %v270_v23  ;;  %v278_v5 = vadd.f32 %v277_v29, %v276_v62  ;;  %v283_v32 = vmul.f32 %v614_v17, %v125_v28  ;;  %v285_v37 = vmul.f32 %v600_v11, %v110_v59 }
  0x4f   :  { %506 = vst [vmem:[%s1235_s1 + $0x120] sm:$0xff] %v269_v49  ;;  %v281_v8 = vadd.f32 %v280_v50, %v279_v53  ;;  %v286_v9 = vmul.f32 %v619_v18, %v119_v15  ;;  %v275_v58 = vadd.f32 %v274_v20, %v273_v36  ;;  %v288_v10 = vmul.f32 %v600_v11, %v113_v48 }
  0x50   :  { %507 = vst [vmem:[%s1235_s1 + $0x128] sm:$0xff] %v272_v19  ;;  %509 = vst [vmem:[%s1235_s1 + $0x138] sm:$0xff] %v278_v5  ;;  %v289_v16 = vmul.f32 %v619_v18, %v122_v54  ;;  %v291_v22 = vmul.f32 %v600_v11, %v116_v61  ;;  %v284_v17 = vadd.f32 %v283_v32, %v282_v21 }
  0x51   :  { %510 = vst [vmem:[%s1235_s1 + $0x140] sm:$0xff] %v281_v8  ;;  %v287_v38 = vadd.f32 %v286_v9, %v285_v37  ;;  %v292_v25 = vmul.f32 %v619_v18, %v125_v28  ;;  %508 = vst [vmem:[%s1235_s1 + $0x130] sm:$0xff] %v275_v58  ;;  %v315_v11 = vmul.f32 %v1097_v63, %v659_v47 }
  0x52   :  { %v290_v30 = vadd.f32 %v289_v16, %v288_v10  ;;  %v317_v14 = vmul.f32 %v912_v34, %v1093_v24  ;;  %511 = vst [vmem:[%s1235_s1 + $0x148] sm:$0xff] %v284_v17  ;;  %v318_v33 = vmul.f32 %v706_v0, %v1095_v46  ;;  %v320_v39 = vmul.f32 %v722_v4, %v1097_v63 }
  0x53   :  { %512 = vst [vmem:[%s1235_s1 + $0x150] sm:$0xff] %v287_v38  ;;  %v293_v18 = vadd.f32 %v292_v25, %v291_v22  ;;  %v322_v47 = vmul.f32 %v944_v41, %v1093_v24  ;;  %v314_v34 = vadd.f32 %v313_v6, %v312_v26  ;;  %v323_v7 = vmul.f32 %v710_v1, %v1095_v46 }
  0x54   :  { %513 = vst [vmem:[%s1235_s1 + $0x158] sm:$0xff] %v290_v30  ;;  %v325_v57 = vmul.f32 %v740_v12, %v1097_v63  ;;  %v327_v0 = vmul.f32 %v930_v3, %v1093_v24  ;;  %v319_v4 = vadd.f32 %v318_v33, %v317_v14  ;;  %v328_v41 = vmul.f32 %v1095_v46, %v649_v43 }
  0x55   :  { %514 = vst [vmem:[%s1235_s1 + $0x160] sm:$0xff] %v293_v18  ;;  %v330_v59 = vmul.f32 %v1097_v63, %v671_v51  ;;  %v332_v1 = vmul.f32 %v948_v42, %v1093_v24  ;;  %v316_v15 = vadd.f32 %v315_v11, %v314_v34  ;;  %v324_v31 = vadd.f32 %v323_v7, %v322_v47 }
  0x56   :  { %v333_v12 = vmul.f32 %v714_v2, %v1095_v46  ;;  %v335_v3 = vmul.f32 %v744_v13, %v1097_v63  ;;  %v321_v40 = vadd.f32 %v320_v39, %v319_v4  ;;  %v329_v48 = vadd.f32 %v328_v41, %v327_v0 }
  0x57   :  { %v337_v54 = vmul.f32 %v951_v52, %v1093_v24  ;;  %v338_v43 = vmul.f32 %v1095_v46, %v653_v44  ;;  %515 = vst [vmem:[%s1235_s1 + $0x168] sm:$0xff] %v316_v15  ;;  %v326_v51 = vadd.f32 %v325_v57, %v324_v31  ;;  %v340_v2 = vmul.f32 %v1097_v63, %v684_v55 }
  0x58   :  { %v334_v42 = vadd.f32 %v333_v12, %v332_v1  ;;  %516 = vst [vmem:[%s1235_s1 + $0x170] sm:$0xff] %v321_v40  ;;  %518 = vst [vmem:[%s1235_s1 + $0x180] sm:$0xff] %v321_v40  ;;  %v331_v13 = vadd.f32 %v330_v59, %v329_v48 }
  0x59   :  { %v339_v52 = vadd.f32 %v338_v43, %v337_v54  ;;  %517 = vst [vmem:[%s1235_s1 + $0x178] sm:$0xff] %v326_v51  ;;  %521 = vst [vmem:[%s1235_s1 + $0x198] sm:$0xff] %v326_v51 }
  0x5a   :  { %v336_v44 = vadd.f32 %v335_v3, %v334_v42  ;;  %519 = vst [vmem:[%s1235_s1 + $0x188] sm:$0xff] %v331_v13 }
  0x5b   :  { %v341_v55 = vadd.f32 %v340_v2, %v339_v52 }
  0x5c   :  { %520 = vst [vmem:[%s1235_s1 + $0x190] sm:$0xff] %v336_v44  ;;  %522 = vst [vmem:[%s1235_s1 + $0x1a0] sm:$0xff] %v336_v44 }
  0x5d   :  { %523 = vst [vmem:[%s1235_s1 + $0x1a8] sm:$0xff] %v341_v55 }

</bundles_post_ra>
